<compile_context>
chip_gen: v5e
topology: v5e:2x2
jax: 0.10.0
libtpu: 0.0.40
codegen_flags: <defaults>
</compile_context>

<pallas_src>
import jax
import jax.numpy as jnp
from jax import lax
from jax.experimental import pallas as pl
from jax.experimental.pallas import tpu as pltpu

# ---------------- small configuration (stand-in for CLIP ViT / ResNet) -------
B = 2
IMG = 16
IN_CH = 3
PATCH = 8
GRID = IMG // PATCH            # 2
N_PATCH = GRID * GRID          # 4
SEQ = N_PATCH + 1              # 5 tokens (cls + patches)
WIDTH = 32                     # CLIP transformer width
N_HEADS = 4
PROJ_DIM = 32                  # CLIP output embedding dim (512 in real model)
RN_C = 48                      # ResNet feature channels (2048 in real model)
RN_SP = 4                      # ResNet feature-map spatial size -> R = 16
NCLASS = 8
NATT = 10
ATT_DIM = 32                   # attribute embedding dim (512 in real model)
SEEN = jnp.array([0, 1, 2, 3, 4])

_EPS_SQ = 1e-24                # matches torch F.normalize(eps=1e-12) on the norm


# ------------------------------- Pallas kernels ------------------------------
def _matmul_kernel(a_ref, b_ref, o_ref):
    o_ref[...] = jnp.dot(a_ref[...], b_ref[...], preferred_element_type=jnp.float32)


def pallas_matmul(a, b):
    # TODO(synk): tile over (M, N, K) with f32 accumulator scratch when the
    # patch-embedding reaches real CLIP sizes; a single full block is fine here.
    M, K = a.shape
    _, N = b.shape
    return pl.pallas_call(
        _matmul_kernel,
        out_shape=jax.ShapeDtypeStruct((M, N), jnp.float32),
        grid=(1,),
        in_specs=[pl.BlockSpec((M, K), lambda i: (0, 0)),
                  pl.BlockSpec((K, N), lambda i: (0, 0))],
        out_specs=pl.BlockSpec((M, N), lambda i: (0, 0)),
    )(a, b)


def _apan_head_kernel(cls_ref, cn_ref, xc_ref, xr_ref, y_ref,
                      wc_ref, wr_ref, a2c_ref, bias_ref, o_ref):
    """Fused APAN head: cos_sim + two InteractAttention paths, one grid step."""
    # ---------------- global logits: cos_sim(cls_token, classnames) ----------
    cn = cn_ref[...]                                                   # (C, D)
    cn = cn * lax.rsqrt(jnp.maximum(jnp.sum(cn * cn, axis=-1, keepdims=True), _EPS_SQ))
    # x @ y_n.T via dot_general (contract last dims; no explicit transpose)
    g = lax.dot_general(cls_ref[...], cn, (((1,), (1,)), ((), ())),
                        preferred_element_type=jnp.float32)            # (B, C)

    y = y_ref[...]                                                     # (I, V)
    a2c = a2c_ref[...]                                                 # (I, K)
    bias = bias_ref[...]                                               # (1, K)

    def interact(x, w_cat):
        # x: (B, F, R)  w_cat: (V, 3F) = [W1 | W2 | W3]
        bsz, f_dim, _ = x.shape
        # F.normalize(x, dim=1) via rsqrt of clamped sum-of-squares (EUP slot)
        ss = jnp.sum(x * x, axis=1, keepdims=True)                     # (B, 1, R)
        xn = x * lax.rsqrt(jnp.maximum(ss, _EPS_SQ))
        # Batch-invariant attribute projections: ONE MXU dot for W1|W2|W3,
        # hoisted out of the per-batch loop.
        yw = jnp.dot(y, w_cat, preferred_element_type=jnp.float32)     # (I, 3F)
        yw1 = yw[:, :f_dim]
        yw2 = yw[:, f_dim:2 * f_dim]
        yw3 = yw[:, 2 * f_dim:]

        rows = []
        for b in range(bsz):                                           # static unroll (B small)
            xb = xn[b]                                                 # (F, R)
            S = jnp.dot(yw1, xb, preferred_element_type=jnp.float32)   # (I, R)
            a = jnp.dot(yw2, xb, preferred_element_type=jnp.float32)   # (I, R)
            a = a - jnp.max(a, axis=-1, keepdims=True)
            e = jnp.exp(a)
            inv = pl.reciprocal(jnp.sum(e, axis=-1, keepdims=True), approx=True)
            A = e * inv                                                # softmax over regions
            # F_p = A @ xb.T without the transpose (contract region axis)
            F_p = lax.dot_general(A, xb, (((1,), (1,)), ((), ())),
                                  preferred_element_type=jnp.float32)  # (I, F)
            S_p = jnp.sum(A * S, axis=-1, keepdims=True)               # (I, 1)
            A_p = jax.nn.sigmoid(jnp.sum(yw3 * F_p, axis=-1, keepdims=True))  # (I, 1)
            w = A_p * S_p                                              # (I, 1)
            spp = jnp.sum(w * a2c, axis=0, keepdims=True)              # (1, K)
            rows.append(spp + bias)
        return jnp.concatenate(rows, axis=0)                           # (B, K)

    clip_d = interact(xc_ref[...], wc_ref[...])
    rn_d = interact(xr_ref[...], wr_ref[...])

    # Single lane-packed store: [global | clip_dense | rn_dense] along lanes.
    o_ref[...] = jnp.concatenate([g, clip_d, rn_d], axis=-1)           # (B, 3K)


def pallas_apan_head(cls_token, classnames, x_clip, x_rn, attributes,
                     w_cat_clip, w_cat_rn, att2cls, vec_bias):
    bsz = cls_token.shape[0]
    k = att2cls.shape[1]

    def full_spec(shape):
        return pl.BlockSpec(shape, lambda i, _s=len(shape): (0,) * _s)

    out = pl.pallas_call(
        _apan_head_kernel,
        out_shape=jax.ShapeDtypeStruct((bsz, 3 * k), jnp.float32),
        grid=(1,),
        in_specs=[full_spec(cls_token.shape), full_spec(classnames.shape),
                  full_spec(x_clip.shape), full_spec(x_rn.shape),
                  full_spec(attributes.shape), full_spec(w_cat_clip.shape),
                  full_spec(w_cat_rn.shape), full_spec(att2cls.shape),
                  full_spec(vec_bias.shape)],
        out_specs=full_spec((bsz, 3 * k)),
        compiler_params=pltpu.CompilerParams(dimension_semantics=("arbitrary",)),
    )(cls_token, classnames, x_clip, x_rn, attributes,
      w_cat_clip, w_cat_rn, att2cls, vec_bias)

    return out[:, :k], out[:, k:2 * k], out[:, 2 * k:]


# ------------------------- backbone stand-ins (plain JAX glue) ----------------
def layer_norm(x, g, b, eps=1e-5):
    mu = jnp.mean(x, axis=-1, keepdims=True)
    var = jnp.mean((x - mu) ** 2, axis=-1, keepdims=True)
    return (x - mu) / jnp.sqrt(var + eps) * g + b


def mha(x, p):
    Bx, S, D = x.shape
    qkv = x @ p["wqkv"].T + p["bqkv"]
    q, k, v = jnp.split(qkv, 3, axis=-1)
    hd = D // N_HEADS

    def heads(t):
        return t.reshape(Bx, S, N_HEADS, hd).transpose(0, 2, 1, 3)

    q, k, v = heads(q), heads(k), heads(v)
    attn = jax.nn.softmax((q @ k.transpose(0, 1, 3, 2)) / (hd ** 0.5), axis=-1)
    o = (attn @ v).transpose(0, 2, 1, 3).reshape(Bx, S, D)
    return o @ p["wo"].T + p["bo"]


def transformer_block(x, p):
    x = x + mha(layer_norm(x, p["ln1_g"], p["ln1_b"]), p)
    h = layer_norm(x, p["ln2_g"], p["ln2_b"])
    h = jax.nn.gelu(h @ p["w_fc"].T + p["b_fc"])
    h = h @ p["w_proj"].T + p["b_proj"]
    return x + h


def forward_clip_visual(x, params):
    Bx = x.shape[0]
    # conv1 (kernel == stride == patch) implemented as a Pallas matmul over patches
    patches = x.reshape(Bx, IN_CH, GRID, PATCH, GRID, PATCH)
    patches = patches.transpose(0, 2, 4, 1, 3, 5).reshape(Bx * N_PATCH, IN_CH * PATCH * PATCH)
    w_flat = params["conv1_w"].reshape(WIDTH, IN_CH * PATCH * PATCH).T
    tok = pallas_matmul(patches, w_flat).reshape(Bx, N_PATCH, WIDTH)

    cls = jnp.broadcast_to(params["class_embedding"], (Bx, 1, WIDTH))
    h = jnp.concatenate([cls, tok], axis=1)
    h = h + params["positional_embedding"]
    h = layer_norm(h, params["ln_pre_g"], params["ln_pre_b"])
    # TODO(synk): real CLIP visual transformer has many pretrained layers; a single
    # deterministic layer stand-in is used here.
    h = transformer_block(h, params["tblock"])
    h = layer_norm(h, params["ln_post_g"], params["ln_post_b"])
    return h


def forward_resnet(x, params):
    # TODO(synk): pretrained ResNet backbone replaced by a small deterministic conv stand-in.
    stride = IMG // RN_SP
    y = lax.conv_general_dilated(
        x, params["rn_conv_w"], window_strides=(stride, stride), padding="VALID",
        dimension_numbers=("NCHW", "OIHW", "NCHW"))
    return jax.nn.relu(y + params["rn_conv_b"][None, :, None, None])


# --------------------------------- APAN forward -------------------------------
def apan_forward(params, x, classnames, att2cls):
    x_clip = forward_clip_visual(x, params) @ params["proj"]          # (B, SEQ, PROJ_DIM)
    x_resnet = forward_resnet(x, params)                              # (B, RN_C, RN_SP, RN_SP)

    cls_token = x_clip[:, 0, :]
    local_tokens = jnp.transpose(x_clip[:, 1:, :], (0, 2, 1))         # (B, PROJ_DIM, N_PATCH)
    sh = x_resnet.shape
    x_rn_flat = x_resnet.reshape(sh[0], sh[1], sh[2] * sh[3])         # (B, RN_C, 16)

    # Concatenated InteractAttention weights -> one MXU dot per path in-kernel.
    w_cat_clip = jnp.concatenate(
        [params["clip_W1"], params["clip_W2"], params["clip_W3"]], axis=1)    # (V, 3*PROJ_DIM)
    w_cat_rn = jnp.concatenate(
        [params["rn_W1"], params["rn_W2"], params["rn_W3"]], axis=1)          # (V, 3*RN_C)

    global_logits, clip_dense, rn_dense = pallas_apan_head(
        cls_token, classnames, local_tokens, x_rn_flat,
        params["attributes"], w_cat_clip, w_cat_rn, att2cls, params["vec_bias"])
    return global_logits, clip_dense, rn_dense


# --------------------------------- parameters ---------------------------------
def init_params(key):
    ks = jax.random.split(key, 16)
    n = lambda k, shape, s=0.05: s * jax.random.normal(k, shape, jnp.float32)
    p = {
        "conv1_w": n(ks[0], (WIDTH, IN_CH, PATCH, PATCH)),
        "class_embedding": n(ks[1], (WIDTH,)),
        "positional_embedding": n(ks[2], (SEQ, WIDTH)),
        "ln_pre_g": jnp.ones((WIDTH,)), "ln_pre_b": jnp.zeros((WIDTH,)),
        "ln_post_g": jnp.ones((WIDTH,)), "ln_post_b": jnp.zeros((WIDTH,)),
        "proj": n(ks[3], (WIDTH, PROJ_DIM)),
        "tblock": {
            "ln1_g": jnp.ones((WIDTH,)), "ln1_b": jnp.zeros((WIDTH,)),
            "ln2_g": jnp.ones((WIDTH,)), "ln2_b": jnp.zeros((WIDTH,)),
            "wqkv": n(ks[4], (3 * WIDTH, WIDTH)), "bqkv": jnp.zeros((3 * WIDTH,)),
            "wo": n(ks[5], (WIDTH, WIDTH)), "bo": jnp.zeros((WIDTH,)),
            "w_fc": n(ks[6], (4 * WIDTH, WIDTH)), "b_fc": jnp.zeros((4 * WIDTH,)),
            "w_proj": n(ks[7], (WIDTH, 4 * WIDTH)), "b_proj": jnp.zeros((WIDTH,)),
        },
        "rn_conv_w": n(ks[8], (RN_C, IN_CH, IMG // RN_SP, IMG // RN_SP)),
        "rn_conv_b": jnp.zeros((RN_C,)),
        # ----- APAN-specific parameters (InteractAttention heads, attributes) -----
        "attributes": jax.random.normal(ks[9], (NATT, ATT_DIM), jnp.float32),
        "clip_W1": jax.random.normal(ks[10], (ATT_DIM, PROJ_DIM), jnp.float32),  # normal_ init
        "clip_W2": jnp.zeros((ATT_DIM, PROJ_DIM), jnp.float32),                  # zeros_ init
        "clip_W3": jnp.zeros((ATT_DIM, PROJ_DIM), jnp.float32),
        "rn_W1": jax.random.normal(ks[11], (ATT_DIM, RN_C), jnp.float32),
        "rn_W2": jnp.zeros((ATT_DIM, RN_C), jnp.float32),
        "rn_W3": jnp.zeros((ATT_DIM, RN_C), jnp.float32),
    }
    vec_bias = jnp.ones((1, NCLASS), jnp.float32)
    vec_bias = vec_bias.at[:, SEEN].multiply(-1.0)                     # seen classes -> -1
    p["vec_bias"] = vec_bias
    return p


# ------------------------------------ main -------------------------------------
if __name__ == "__main__":
    key = jax.random.PRNGKey(0)
    kp, kx, kc, ka = jax.random.split(key, 4)
    params = init_params(kp)

    x = jax.random.normal(kx, (B, IN_CH, IMG, IMG), jnp.float32)
    classnames = jax.random.normal(kc, (NCLASS, PROJ_DIM), jnp.float32)
    att2cls = jax.random.uniform(ka, (NATT, NCLASS), jnp.float32)

    apan_jit = jax.jit(apan_forward)
    global_logits, clip_dense, rn_dense = apan_jit(params, x, classnames, att2cls)
    jax.block_until_ready((global_logits, clip_dense, rn_dense))

    # ------- pure-JAX reference for the Pallas hot paths (correctness check) -------
    hi = lax.Precision.HIGHEST

    def ref_cos_sim(xv, yv):
        yn = yv / jnp.maximum(jnp.linalg.norm(yv, axis=1, keepdims=True), 1e-12)
        return jnp.einsum("bd,cd->bc", xv, yn, precision=hi)

    def ref_interact(xv, yv, W1, W2, W3, a2c, bias):
        xn = xv / jnp.maximum(jnp.linalg.norm(xv, axis=1, keepdims=True), 1e-12)
        S = jnp.einsum("iv,vf,bfr->bir", yv, W1, xn, precision=hi)
        A = jax.nn.softmax(jnp.einsum("iv,vf,bfr->bir", yv, W2, xn, precision=hi), axis=-1)
        F_p = jnp.einsum("bir,bfr->bif", A, xn, precision=hi)
        S_p = jnp.einsum("bir,bir->bi", A, S, precision=hi)
        A_p = jax.nn.sigmoid(jnp.einsum("iv,vf,bif->bi", yv, W3, F_p, precision=hi))
        return jnp.einsum("ik,bi,bi->bk", a2c, A_p, S_p, precision=hi) + bias

    x_clip = forward_clip_visual(x, params) @ params["proj"]
    x_rn = forward_resnet(x, params)
    ref_g = ref_cos_sim(x_clip[:, 0, :], classnames)
    ref_c = ref_interact(jnp.transpose(x_clip[:, 1:, :], (0, 2, 1)), params["attributes"],
                         params["clip_W1"], params["clip_W2"], params["clip_W3"],
                         att2cls, params["vec_bias"])
    ref_r = ref_interact(x_rn.reshape(B, RN_C, -1), params["attributes"],
                         params["rn_W1"], params["rn_W2"], params["rn_W3"],
                         att2cls, params["vec_bias"])

    assert jnp.allclose(global_logits, ref_g, rtol=5e-3, atol=5e-3)
    assert jnp.allclose(clip_dense, ref_c, rtol=5e-3, atol=5e-3)
    assert jnp.allclose(rn_dense, ref_r, rtol=5e-3, atol=5e-3)

    print("KERNEL_OK")
</pallas_src>

<mosaic_0001>
module attributes {stable_mosaic.version = 11 : i64} {
  func.func @_matmul_kernel(%arg0: i32, %arg1: memref<8x192xf32, #tpu.memory_space<vmem>>, %arg2: memref<192x32xf32, #tpu.memory_space<vmem>>, %arg3: memref<8x32xf32, #tpu.memory_space<vmem>>) attributes {dimension_semantics = [#tpu.dimension_semantics<arbitrary>], iteration_bounds = array<i64: 1>, scalar_prefetch = 0 : i64, scratch_operands = 0 : i64, tpu.core_type = #tpu.core_type<tc>, window_params = [{pipeline_mode = #tpu.pipeline_mode<synchronous>, transform_indices = @transform_0, window_bounds = array<i64: 8, 192>}, {pipeline_mode = #tpu.pipeline_mode<synchronous>, transform_indices = @transform_1, window_bounds = array<i64: 192, 32>}, {pipeline_mode = #tpu.pipeline_mode<synchronous>, transform_indices = @transform_2, window_bounds = array<i64: 8, 32>}]} {
    %c0 = arith.constant 0 : index
    %c0_0 = arith.constant 0 : index
    %0 = vector.load %arg1[%c0, %c0_0] : memref<8x192xf32, #tpu.memory_space<vmem>>, vector<8x192xf32>
    %c0_1 = arith.constant 0 : index
    %c0_2 = arith.constant 0 : index
    %1 = vector.load %arg2[%c0_1, %c0_2] : memref<192x32xf32, #tpu.memory_space<vmem>>, vector<192x32xf32>
    %cst = arith.constant dense<0.000000e+00> : vector<8x32xf32>
    %2 = tpu.matmul %0, %1, %cst {dimension_numbers = #tpu.dot_dimension_numbers<[1], [0], [0], [1], [0, 0, 1, 1], [], []>} : vector<8x192xf32>, vector<192x32xf32>, vector<8x32xf32> -> vector<8x32xf32>
    %c0_3 = arith.constant 0 : index
    %c0_4 = arith.constant 0 : index
    %3 = vector.load %arg3[%c0_3, %c0_4] : memref<8x32xf32, #tpu.memory_space<vmem>>, vector<8x32xf32>
    tpu.vector_store %arg3[%c0_3, %c0_4], %2 {strides = array<i32>} : memref<8x32xf32, #tpu.memory_space<vmem>>, vector<8x32xf32>,
    return
  }
  func.func @transform_0(%arg0: i32) -> (i32, i32) {
    %c0_i32 = arith.constant 0 : i32
    %c0_i32_0 = arith.constant 0 : i32
    %c0_i32_1 = arith.constant 0 : i32
    return %c0_i32, %c0_i32_0 : i32, i32
  }
  func.func @transform_1(%arg0: i32) -> (i32, i32) {
    %c0_i32 = arith.constant 0 : i32
    %c0_i32_0 = arith.constant 0 : i32
    %c0_i32_1 = arith.constant 0 : i32
    return %c0_i32, %c0_i32_0 : i32, i32
  }
  func.func @transform_2(%arg0: i32) -> (i32, i32) {
    %c0_i32 = arith.constant 0 : i32
    %c0_i32_0 = arith.constant 0 : i32
    %c0_i32_1 = arith.constant 0 : i32
    return %c0_i32, %c0_i32_0 : i32, i32
  }
}

module attributes {stable_mosaic.version = 11 : i64} {
  func.func @_apan_head_kernel(%arg0: i32, %arg1: memref<2x32xf32, #tpu.memory_space<vmem>>, %arg2: memref<8x32xf32, #tpu.memory_space<vmem>>, %arg3: memref<2x32x4xf32, #tpu.memory_space<vmem>>, %arg4: memref<2x48x16xf32, #tpu.memory_space<vmem>>, %arg5: memref<10x32xf32, #tpu.memory_space<vmem>>, %arg6: memref<32x96xf32, #tpu.memory_space<vmem>>, %arg7: memref<32x144xf32, #tpu.memory_space<vmem>>, %arg8: memref<10x8xf32, #tpu.memory_space<vmem>>, %arg9: memref<1x8xf32, #tpu.memory_space<vmem>>, %arg10: memref<2x24xf32, #tpu.memory_space<vmem>>) attributes {dimension_semantics = [#tpu.dimension_semantics<arbitrary>], iteration_bounds = array<i64: 1>, scalar_prefetch = 0 : i64, scratch_operands = 0 : i64, tpu.core_type = #tpu.core_type<tc>, window_params = [{pipeline_mode = #tpu.pipeline_mode<synchronous>, transform_indices = @transform_0, window_bounds = array<i64: 2, 32>}, {pipeline_mode = #tpu.pipeline_mode<synchronous>, transform_indices = @transform_1, window_bounds = array<i64: 8, 32>}, {pipeline_mode = #tpu.pipeline_mode<synchronous>, transform_indices = @transform_2, window_bounds = array<i64: 2, 32, 4>}, {pipeline_mode = #tpu.pipeline_mode<synchronous>, transform_indices = @transform_3, window_bounds = array<i64: 2, 48, 16>}, {pipeline_mode = #tpu.pipeline_mode<synchronous>, transform_indices = @transform_4, window_bounds = array<i64: 10, 32>}, {pipeline_mode = #tpu.pipeline_mode<synchronous>, transform_indices = @transform_5, window_bounds = array<i64: 32, 96>}, {pipeline_mode = #tpu.pipeline_mode<synchronous>, transform_indices = @transform_6, window_bounds = array<i64: 32, 144>}, {pipeline_mode = #tpu.pipeline_mode<synchronous>, transform_indices = @transform_7, window_bounds = array<i64: 10, 8>}, {pipeline_mode = #tpu.pipeline_mode<synchronous>, transform_indices = @transform_8, window_bounds = array<i64: 1, 8>}, {pipeline_mode = #tpu.pipeline_mode<synchronous>, transform_indices = @transform_9, window_bounds = array<i64: 2, 24>}]} {
    %c0 = arith.constant 0 : index
    %c0_0 = arith.constant 0 : index
    %0 = vector.load %arg2[%c0, %c0_0] : memref<8x32xf32, #tpu.memory_space<vmem>>, vector<8x32xf32>
    %1 = arith.mulf %0, %0 : vector<8x32xf32>
    %cst = arith.constant dense<0.000000e+00> : vector<8xf32>
    %2 = vector.multi_reduction <add>, %1, %cst [1] : vector<8x32xf32> to vector<8xf32>
    %3 = vector.shape_cast %2 : vector<8xf32> to vector<8x1xf32>
    %cst_1 = arith.constant 1.000000e-24 : f32
    %4 = vector.broadcast %cst_1 : f32 to vector<8x1xf32>
    %5 = arith.maximumf %3, %4 : vector<8x1xf32>
    %6 = math.rsqrt %5 : vector<8x1xf32>
    %7 = vector.broadcast %6 : vector<8x1xf32> to vector<8x32xf32>
    %8 = arith.mulf %0, %7 : vector<8x32xf32>
    %c0_2 = arith.constant 0 : index
    %c0_3 = arith.constant 0 : index
    %9 = vector.load %arg1[%c0_2, %c0_3] : memref<2x32xf32, #tpu.memory_space<vmem>>, vector<2x32xf32>
    %cst_4 = arith.constant dense<0.000000e+00> : vector<2x8xf32>
    %10 = tpu.matmul %9, %8, %cst_4 {dimension_numbers = #tpu.dot_dimension_numbers<[1], [1], [0], [0], [0, 0, 1, 0], [], []>} : vector<2x32xf32>, vector<8x32xf32>, vector<2x8xf32> -> vector<2x8xf32>
    %c0_5 = arith.constant 0 : index
    %c0_6 = arith.constant 0 : index
    %11 = vector.load %arg5[%c0_5, %c0_6] : memref<10x32xf32, #tpu.memory_space<vmem>>, vector<10x32xf32>
    %c0_7 = arith.constant 0 : index
    %c0_8 = arith.constant 0 : index
    %12 = vector.load %arg8[%c0_7, %c0_8] : memref<10x8xf32, #tpu.memory_space<vmem>>, vector<10x8xf32>
    %c0_9 = arith.constant 0 : index
    %c0_10 = arith.constant 0 : index
    %13 = vector.load %arg9[%c0_9, %c0_10] : memref<1x8xf32, #tpu.memory_space<vmem>>, vector<1x8xf32>
    %c0_11 = arith.constant 0 : index
    %c0_12 = arith.constant 0 : index
    %c0_13 = arith.constant 0 : index
    %14 = vector.load %arg3[%c0_11, %c0_12, %c0_13] : memref<2x32x4xf32, #tpu.memory_space<vmem>>, vector<2x32x4xf32>
    %c0_14 = arith.constant 0 : index
    %c0_15 = arith.constant 0 : index
    %15 = vector.load %arg6[%c0_14, %c0_15] : memref<32x96xf32, #tpu.memory_space<vmem>>, vector<32x96xf32>
    %16 = arith.mulf %14, %14 : vector<2x32x4xf32>
    %cst_16 = arith.constant dense<0.000000e+00> : vector<2x4xf32>
    %17 = vector.multi_reduction <add>, %16, %cst_16 [1] : vector<2x32x4xf32> to vector<2x4xf32>
    %18 = vector.shape_cast %17 : vector<2x4xf32> to vector<2x1x4xf32>
    %cst_17 = arith.constant 1.000000e-24 : f32
    %19 = vector.broadcast %cst_17 : f32 to vector<2x1x4xf32>
    %20 = arith.maximumf %18, %19 : vector<2x1x4xf32>
    %21 = math.rsqrt %20 : vector<2x1x4xf32>
    %22 = vector.broadcast %21 : vector<2x1x4xf32> to vector<2x32x4xf32>
    %23 = arith.mulf %14, %22 : vector<2x32x4xf32>
    %cst_18 = arith.constant dense<0.000000e+00> : vector<10x96xf32>
    %24 = tpu.matmul %11, %15, %cst_18 {dimension_numbers = #tpu.dot_dimension_numbers<[1], [0], [0], [1], [0, 0, 1, 1], [], []>} : vector<10x32xf32>, vector<32x96xf32>, vector<10x96xf32> -> vector<10x96xf32>
    %25 = vector.extract_strided_slice %24 {offsets = [0, 0], sizes = [10, 32], strides = [1, 1]} : vector<10x96xf32> to vector<10x32xf32>
    %26 = vector.extract_strided_slice %24 {offsets = [0, 32], sizes = [10, 32], strides = [1, 1]} : vector<10x96xf32> to vector<10x32xf32>
    %27 = vector.extract_strided_slice %24 {offsets = [0, 64], sizes = [10, 32], strides = [1, 1]} : vector<10x96xf32> to vector<10x32xf32>
    %28 = vector.extract_strided_slice %23 {offsets = [0, 0, 0], sizes = [1, 32, 4], strides = [1, 1, 1]} : vector<2x32x4xf32> to vector<1x32x4xf32>
    %29 = vector.shape_cast %28 : vector<1x32x4xf32> to vector<32x4xf32>
    %cst_19 = arith.constant dense<0.000000e+00> : vector<10x4xf32>
    %30 = tpu.matmul %25, %29, %cst_19 {dimension_numbers = #tpu.dot_dimension_numbers<[1], [0], [0], [1], [0, 0, 1, 1], [], []>} : vector<10x32xf32>, vector<32x4xf32>, vector<10x4xf32> -> vector<10x4xf32>
    %cst_20 = arith.constant dense<0.000000e+00> : vector<10x4xf32>
    %31 = tpu.matmul %26, %29, %cst_20 {dimension_numbers = #tpu.dot_dimension_numbers<[1], [0], [0], [1], [0, 0, 1, 1], [], []>} : vector<10x32xf32>, vector<32x4xf32>, vector<10x4xf32> -> vector<10x4xf32>
    %cst_21 = arith.constant dense<0xFF800000> : vector<10xf32>
    %32 = vector.multi_reduction <maximumf>, %31, %cst_21 [1] : vector<10x4xf32> to vector<10xf32>
    %33 = vector.shape_cast %32 : vector<10xf32> to vector<10x1xf32>
    %34 = vector.broadcast %33 : vector<10x1xf32> to vector<10x4xf32>
    %35 = arith.subf %31, %34 : vector<10x4xf32>
    %36 = math.exp %35 : vector<10x4xf32>
    %cst_22 = arith.constant dense<0.000000e+00> : vector<10xf32>
    %37 = vector.multi_reduction <add>, %36, %cst_22 [1] : vector<10x4xf32> to vector<10xf32>
    %38 = vector.shape_cast %37 : vector<10xf32> to vector<10x1xf32>
    %39 = tpu.reciprocal %38 {approx = true} : vector<10x1xf32> -> vector<10x1xf32>
    %40 = vector.broadcast %39 : vector<10x1xf32> to vector<10x4xf32>
    %41 = arith.mulf %36, %40 : vector<10x4xf32>
    %cst_23 = arith.constant dense<0.000000e+00> : vector<10x32xf32>
    %42 = tpu.matmul %41, %29, %cst_23 {dimension_numbers = #tpu.dot_dimension_numbers<[1], [1], [0], [0], [0, 0, 1, 0], [], []>} : vector<10x4xf32>, vector<32x4xf32>, vector<10x32xf32> -> vector<10x32xf32>
    %43 = arith.mulf %41, %30 : vector<10x4xf32>
    %cst_24 = arith.constant dense<0.000000e+00> : vector<10xf32>
    %44 = vector.multi_reduction <add>, %43, %cst_24 [1] : vector<10x4xf32> to vector<10xf32>
    %45 = vector.shape_cast %44 : vector<10xf32> to vector<10x1xf32>
    %46 = arith.mulf %27, %42 : vector<10x32xf32>
    %cst_25 = arith.constant dense<0.000000e+00> : vector<10xf32>
    %47 = vector.multi_reduction <add>, %46, %cst_25 [1] : vector<10x32xf32> to vector<10xf32>
    %48 = vector.shape_cast %47 : vector<10xf32> to vector<10x1xf32>
    %49 = arith.negf %48 : vector<10x1xf32>
    %50 = math.exp %49 : vector<10x1xf32>
    %cst_26 = arith.constant 1.000000e+00 : f32
    %51 = vector.broadcast %cst_26 : f32 to vector<10x1xf32>
    %52 = arith.addf %51, %50 : vector<10x1xf32>
    %53 = arith.divf %51, %52 : vector<10x1xf32>
    %54 = arith.mulf %53, %45 : vector<10x1xf32>
    %55 = vector.broadcast %54 : vector<10x1xf32> to vector<10x8xf32>
    %56 = arith.mulf %55, %12 : vector<10x8xf32>
    %cst_27 = arith.constant dense<0.000000e+00> : vector<8xf32>
    %57 = vector.multi_reduction <add>, %56, %cst_27 [0] : vector<10x8xf32> to vector<8xf32>
    %58 = vector.shape_cast %57 : vector<8xf32> to vector<1x8xf32>
    %59 = arith.addf %58, %13 : vector<1x8xf32>
    %60 = vector.extract_strided_slice %23 {offsets = [1, 0, 0], sizes = [1, 32, 4], strides = [1, 1, 1]} : vector<2x32x4xf32> to vector<1x32x4xf32>
    %61 = vector.shape_cast %60 : vector<1x32x4xf32> to vector<32x4xf32>
    %cst_28 = arith.constant dense<0.000000e+00> : vector<10x4xf32>
    %62 = tpu.matmul %25, %61, %cst_28 {dimension_numbers = #tpu.dot_dimension_numbers<[1], [0], [0], [1], [0, 0, 1, 1], [], []>} : vector<10x32xf32>, vector<32x4xf32>, vector<10x4xf32> -> vector<10x4xf32>
    %cst_29 = arith.constant dense<0.000000e+00> : vector<10x4xf32>
    %63 = tpu.matmul %26, %61, %cst_29 {dimension_numbers = #tpu.dot_dimension_numbers<[1], [0], [0], [1], [0, 0, 1, 1], [], []>} : vector<10x32xf32>, vector<32x4xf32>, vector<10x4xf32> -> vector<10x4xf32>
    %cst_30 = arith.constant dense<0xFF800000> : vector<10xf32>
    %64 = vector.multi_reduction <maximumf>, %63, %cst_30 [1] : vector<10x4xf32> to vector<10xf32>
    %65 = vector.shape_cast %64 : vector<10xf32> to vector<10x1xf32>
    %66 = vector.broadcast %65 : vector<10x1xf32> to vector<10x4xf32>
    %67 = arith.subf %63, %66 : vector<10x4xf32>
    %68 = math.exp %67 : vector<10x4xf32>
    %cst_31 = arith.constant dense<0.000000e+00> : vector<10xf32>
    %69 = vector.multi_reduction <add>, %68, %cst_31 [1] : vector<10x4xf32> to vector<10xf32>
    %70 = vector.shape_cast %69 : vector<10xf32> to vector<10x1xf32>
    %71 = tpu.reciprocal %70 {approx = true} : vector<10x1xf32> -> vector<10x1xf32>
    %72 = vector.broadcast %71 : vector<10x1xf32> to vector<10x4xf32>
    %73 = arith.mulf %68, %72 : vector<10x4xf32>
    %cst_32 = arith.constant dense<0.000000e+00> : vector<10x32xf32>
    %74 = tpu.matmul %73, %61, %cst_32 {dimension_numbers = #tpu.dot_dimension_numbers<[1], [1], [0], [0], [0, 0, 1, 0], [], []>} : vector<10x4xf32>, vector<32x4xf32>, vector<10x32xf32> -> vector<10x32xf32>
    %75 = arith.mulf %73, %62 : vector<10x4xf32>
    %cst_33 = arith.constant dense<0.000000e+00> : vector<10xf32>
    %76 = vector.multi_reduction <add>, %75, %cst_33 [1] : vector<10x4xf32> to vector<10xf32>
    %77 = vector.shape_cast %76 : vector<10xf32> to vector<10x1xf32>
    %78 = arith.mulf %27, %74 : vector<10x32xf32>
    %cst_34 = arith.constant dense<0.000000e+00> : vector<10xf32>
    %79 = vector.multi_reduction <add>, %78, %cst_34 [1] : vector<10x32xf32> to vector<10xf32>
    %80 = vector.shape_cast %79 : vector<10xf32> to vector<10x1xf32>
    %81 = arith.negf %80 : vector<10x1xf32>
    %82 = math.exp %81 : vector<10x1xf32>
    %cst_35 = arith.constant 1.000000e+00 : f32
    %83 = vector.broadcast %cst_35 : f32 to vector<10x1xf32>
    %84 = arith.addf %83, %82 : vector<10x1xf32>
    %85 = arith.divf %83, %84 : vector<10x1xf32>
    %86 = arith.mulf %85, %77 : vector<10x1xf32>
    %87 = vector.broadcast %86 : vector<10x1xf32> to vector<10x8xf32>
    %88 = arith.mulf %87, %12 : vector<10x8xf32>
    %cst_36 = arith.constant dense<0.000000e+00> : vector<8xf32>
    %89 = vector.multi_reduction <add>, %88, %cst_36 [0] : vector<10x8xf32> to vector<8xf32>
    %90 = vector.shape_cast %89 : vector<8xf32> to vector<1x8xf32>
    %91 = arith.addf %90, %13 : vector<1x8xf32>
    %92 = tpu.concatenate %59, %91 in 0 : vector<1x8xf32>, vector<1x8xf32> -> vector<2x8xf32>
    %c0_37 = arith.constant 0 : index
    %c0_38 = arith.constant 0 : index
    %c0_39 = arith.constant 0 : index
    %93 = vector.load %arg4[%c0_37, %c0_38, %c0_39] : memref<2x48x16xf32, #tpu.memory_space<vmem>>, vector<2x48x16xf32>
    %c0_40 = arith.constant 0 : index
    %c0_41 = arith.constant 0 : index
    %94 = vector.load %arg7[%c0_40, %c0_41] : memref<32x144xf32, #tpu.memory_space<vmem>>, vector<32x144xf32>
    %95 = arith.mulf %93, %93 : vector<2x48x16xf32>
    %cst_42 = arith.constant dense<0.000000e+00> : vector<2x16xf32>
    %96 = vector.multi_reduction <add>, %95, %cst_42 [1] : vector<2x48x16xf32> to vector<2x16xf32>
    %97 = vector.shape_cast %96 : vector<2x16xf32> to vector<2x1x16xf32>
    %cst_43 = arith.constant 1.000000e-24 : f32
    %98 = vector.broadcast %cst_43 : f32 to vector<2x1x16xf32>
    %99 = arith.maximumf %97, %98 : vector<2x1x16xf32>
    %100 = math.rsqrt %99 : vector<2x1x16xf32>
    %101 = vector.broadcast %100 : vector<2x1x16xf32> to vector<2x48x16xf32>
    %102 = arith.mulf %93, %101 : vector<2x48x16xf32>
    %cst_44 = arith.constant dense<0.000000e+00> : vector<10x144xf32>
    %103 = tpu.matmul %11, %94, %cst_44 {dimension_numbers = #tpu.dot_dimension_numbers<[1], [0], [0], [1], [0, 0, 1, 1], [], []>} : vector<10x32xf32>, vector<32x144xf32>, vector<10x144xf32> -> vector<10x144xf32>
    %104 = vector.extract_strided_slice %103 {offsets = [0, 0], sizes = [10, 48], strides = [1, 1]} : vector<10x144xf32> to vector<10x48xf32>
    %105 = vector.extract_strided_slice %103 {offsets = [0, 48], sizes = [10, 48], strides = [1, 1]} : vector<10x144xf32> to vector<10x48xf32>
    %106 = vector.extract_strided_slice %103 {offsets = [0, 96], sizes = [10, 48], strides = [1, 1]} : vector<10x144xf32> to vector<10x48xf32>
    %107 = vector.extract_strided_slice %102 {offsets = [0, 0, 0], sizes = [1, 48, 16], strides = [1, 1, 1]} : vector<2x48x16xf32> to vector<1x48x16xf32>
    %108 = vector.shape_cast %107 : vector<1x48x16xf32> to vector<48x16xf32>
    %cst_45 = arith.constant dense<0.000000e+00> : vector<10x16xf32>
    %109 = tpu.matmul %104, %108, %cst_45 {dimension_numbers = #tpu.dot_dimension_numbers<[1], [0], [0], [1], [0, 0, 1, 1], [], []>} : vector<10x48xf32>, vector<48x16xf32>, vector<10x16xf32> -> vector<10x16xf32>
    %cst_46 = arith.constant dense<0.000000e+00> : vector<10x16xf32>
    %110 = tpu.matmul %105, %108, %cst_46 {dimension_numbers = #tpu.dot_dimension_numbers<[1], [0], [0], [1], [0, 0, 1, 1], [], []>} : vector<10x48xf32>, vector<48x16xf32>, vector<10x16xf32> -> vector<10x16xf32>
    %cst_47 = arith.constant dense<0xFF800000> : vector<10xf32>
    %111 = vector.multi_reduction <maximumf>, %110, %cst_47 [1] : vector<10x16xf32> to vector<10xf32>
    %112 = vector.shape_cast %111 : vector<10xf32> to vector<10x1xf32>
    %113 = vector.broadcast %112 : vector<10x1xf32> to vector<10x16xf32>
    %114 = arith.subf %110, %113 : vector<10x16xf32>
    %115 = math.exp %114 : vector<10x16xf32>
    %cst_48 = arith.constant dense<0.000000e+00> : vector<10xf32>
    %116 = vector.multi_reduction <add>, %115, %cst_48 [1] : vector<10x16xf32> to vector<10xf32>
    %117 = vector.shape_cast %116 : vector<10xf32> to vector<10x1xf32>
    %118 = tpu.reciprocal %117 {approx = true} : vector<10x1xf32> -> vector<10x1xf32>
    %119 = vector.broadcast %118 : vector<10x1xf32> to vector<10x16xf32>
    %120 = arith.mulf %115, %119 : vector<10x16xf32>
    %cst_49 = arith.constant dense<0.000000e+00> : vector<10x48xf32>
    %121 = tpu.matmul %120, %108, %cst_49 {dimension_numbers = #tpu.dot_dimension_numbers<[1], [1], [0], [0], [0, 0, 1, 0], [], []>} : vector<10x16xf32>, vector<48x16xf32>, vector<10x48xf32> -> vector<10x48xf32>
    %122 = arith.mulf %120, %109 : vector<10x16xf32>
    %cst_50 = arith.constant dense<0.000000e+00> : vector<10xf32>
    %123 = vector.multi_reduction <add>, %122, %cst_50 [1] : vector<10x16xf32> to vector<10xf32>
    %124 = vector.shape_cast %123 : vector<10xf32> to vector<10x1xf32>
    %125 = arith.mulf %106, %121 : vector<10x48xf32>
    %cst_51 = arith.constant dense<0.000000e+00> : vector<10xf32>
    %126 = vector.multi_reduction <add>, %125, %cst_51 [1] : vector<10x48xf32> to vector<10xf32>
    %127 = vector.shape_cast %126 : vector<10xf32> to vector<10x1xf32>
    %128 = arith.negf %127 : vector<10x1xf32>
    %129 = math.exp %128 : vector<10x1xf32>
    %cst_52 = arith.constant 1.000000e+00 : f32
    %130 = vector.broadcast %cst_52 : f32 to vector<10x1xf32>
    %131 = arith.addf %130, %129 : vector<10x1xf32>
    %132 = arith.divf %130, %131 : vector<10x1xf32>
    %133 = arith.mulf %132, %124 : vector<10x1xf32>
    %134 = vector.broadcast %133 : vector<10x1xf32> to vector<10x8xf32>
    %135 = arith.mulf %134, %12 : vector<10x8xf32>
    %cst_53 = arith.constant dense<0.000000e+00> : vector<8xf32>
    %136 = vector.multi_reduction <add>, %135, %cst_53 [0] : vector<10x8xf32> to vector<8xf32>
    %137 = vector.shape_cast %136 : vector<8xf32> to vector<1x8xf32>
    %138 = arith.addf %137, %13 : vector<1x8xf32>
    %139 = vector.extract_strided_slice %102 {offsets = [1, 0, 0], sizes = [1, 48, 16], strides = [1, 1, 1]} : vector<2x48x16xf32> to vector<1x48x16xf32>
    %140 = vector.shape_cast %139 : vector<1x48x16xf32> to vector<48x16xf32>
    %cst_54 = arith.constant dense<0.000000e+00> : vector<10x16xf32>
    %141 = tpu.matmul %104, %140, %cst_54 {dimension_numbers = #tpu.dot_dimension_numbers<[1], [0], [0], [1], [0, 0, 1, 1], [], []>} : vector<10x48xf32>, vector<48x16xf32>, vector<10x16xf32> -> vector<10x16xf32>
    %cst_55 = arith.constant dense<0.000000e+00> : vector<10x16xf32>
    %142 = tpu.matmul %105, %140, %cst_55 {dimension_numbers = #tpu.dot_dimension_numbers<[1], [0], [0], [1], [0, 0, 1, 1], [], []>} : vector<10x48xf32>, vector<48x16xf32>, vector<10x16xf32> -> vector<10x16xf32>
    %cst_56 = arith.constant dense<0xFF800000> : vector<10xf32>
    %143 = vector.multi_reduction <maximumf>, %142, %cst_56 [1] : vector<10x16xf32> to vector<10xf32>
    %144 = vector.shape_cast %143 : vector<10xf32> to vector<10x1xf32>
    %145 = vector.broadcast %144 : vector<10x1xf32> to vector<10x16xf32>
    %146 = arith.subf %142, %145 : vector<10x16xf32>
    %147 = math.exp %146 : vector<10x16xf32>
    %cst_57 = arith.constant dense<0.000000e+00> : vector<10xf32>
    %148 = vector.multi_reduction <add>, %147, %cst_57 [1] : vector<10x16xf32> to vector<10xf32>
    %149 = vector.shape_cast %148 : vector<10xf32> to vector<10x1xf32>
    %150 = tpu.reciprocal %149 {approx = true} : vector<10x1xf32> -> vector<10x1xf32>
    %151 = vector.broadcast %150 : vector<10x1xf32> to vector<10x16xf32>
    %152 = arith.mulf %147, %151 : vector<10x16xf32>
    %cst_58 = arith.constant dense<0.000000e+00> : vector<10x48xf32>
    %153 = tpu.matmul %152, %140, %cst_58 {dimension_numbers = #tpu.dot_dimension_numbers<[1], [1], [0], [0], [0, 0, 1, 0], [], []>} : vector<10x16xf32>, vector<48x16xf32>, vector<10x48xf32> -> vector<10x48xf32>
    %154 = arith.mulf %152, %141 : vector<10x16xf32>
    %cst_59 = arith.constant dense<0.000000e+00> : vector<10xf32>
    %155 = vector.multi_reduction <add>, %154, %cst_59 [1] : vector<10x16xf32> to vector<10xf32>
    %156 = vector.shape_cast %155 : vector<10xf32> to vector<10x1xf32>
    %157 = arith.mulf %106, %153 : vector<10x48xf32>
    %cst_60 = arith.constant dense<0.000000e+00> : vector<10xf32>
    %158 = vector.multi_reduction <add>, %157, %cst_60 [1] : vector<10x48xf32> to vector<10xf32>
    %159 = vector.shape_cast %158 : vector<10xf32> to vector<10x1xf32>
    %160 = arith.negf %159 : vector<10x1xf32>
    %161 = math.exp %160 : vector<10x1xf32>
    %cst_61 = arith.constant 1.000000e+00 : f32
    %162 = vector.broadcast %cst_61 : f32 to vector<10x1xf32>
    %163 = arith.addf %162, %161 : vector<10x1xf32>
    %164 = arith.divf %162, %163 : vector<10x1xf32>
    %165 = arith.mulf %164, %156 : vector<10x1xf32>
    %166 = vector.broadcast %165 : vector<10x1xf32> to vector<10x8xf32>
    %167 = arith.mulf %166, %12 : vector<10x8xf32>
    %cst_62 = arith.constant dense<0.000000e+00> : vector<8xf32>
    %168 = vector.multi_reduction <add>, %167, %cst_62 [0] : vector<10x8xf32> to vector<8xf32>
    %169 = vector.shape_cast %168 : vector<8xf32> to vector<1x8xf32>
    %170 = arith.addf %169, %13 : vector<1x8xf32>
    %171 = tpu.concatenate %138, %170 in 0 : vector<1x8xf32>, vector<1x8xf32> -> vector<2x8xf32>
    %172 = tpu.concatenate %10, %92, %171 in 1 : vector<2x8xf32>, vector<2x8xf32>, vector<2x8xf32> -> vector<2x24xf32>
    %c0_63 = arith.constant 0 : index
    %c0_64 = arith.constant 0 : index
    %173 = vector.load %arg10[%c0_63, %c0_64] : memref<2x24xf32, #tpu.memory_space<vmem>>, vector<2x24xf32>
    tpu.vector_store %arg10[%c0_63, %c0_64], %172 {strides = array<i32>} : memref<2x24xf32, #tpu.memory_space<vmem>>, vector<2x24xf32>,
    return
  }
  func.func @transform_0(%arg0: i32) -> (i32, i32) {
    %c0_i32 = arith.constant 0 : i32
    %c0_i32_0 = arith.constant 0 : i32
    %c0_i32_1 = arith.constant 0 : i32
    return %c0_i32, %c0_i32_0 : i32, i32
  }
  func.func @transform_1(%arg0: i32) -> (i32, i32) {
    %c0_i32 = arith.constant 0 : i32
    %c0_i32_0 = arith.constant 0 : i32
    %c0_i32_1 = arith.constant 0 : i32
    return %c0_i32, %c0_i32_0 : i32, i32
  }
  func.func @transform_2(%arg0: i32) -> (i32, i32, i32) {
    %c0_i32 = arith.constant 0 : i32
    %c0_i32_0 = arith.constant 0 : i32
    %c0_i32_1 = arith.constant 0 : i32
    %c0_i32_2 = arith.constant 0 : i32
    return %c0_i32, %c0_i32_0, %c0_i32_1 : i32, i32, i32
  }
  func.func @transform_3(%arg0: i32) -> (i32, i32, i32) {
    %c0_i32 = arith.constant 0 : i32
    %c0_i32_0 = arith.constant 0 : i32
    %c0_i32_1 = arith.constant 0 : i32
    %c0_i32_2 = arith.constant 0 : i32
    return %c0_i32, %c0_i32_0, %c0_i32_1 : i32, i32, i32
  }
  func.func @transform_4(%arg0: i32) -> (i32, i32) {
    %c0_i32 = arith.constant 0 : i32
    %c0_i32_0 = arith.constant 0 : i32
    %c0_i32_1 = arith.constant 0 : i32
    return %c0_i32, %c0_i32_0 : i32, i32
  }
  func.func @transform_5(%arg0: i32) -> (i32, i32) {
    %c0_i32 = arith.constant 0 : i32
    %c0_i32_0 = arith.constant 0 : i32
    %c0_i32_1 = arith.constant 0 : i32
    return %c0_i32, %c0_i32_0 : i32, i32
  }
  func.func @transform_6(%arg0: i32) -> (i32, i32) {
    %c0_i32 = arith.constant 0 : i32
    %c0_i32_0 = arith.constant 0 : i32
    %c0_i32_1 = arith.constant 0 : i32
    return %c0_i32, %c0_i32_0 : i32, i32
  }
  func.func @transform_7(%arg0: i32) -> (i32, i32) {
    %c0_i32 = arith.constant 0 : i32
    %c0_i32_0 = arith.constant 0 : i32
    %c0_i32_1 = arith.constant 0 : i32
    return %c0_i32, %c0_i32_0 : i32, i32
  }
  func.func @transform_8(%arg0: i32) -> (i32, i32) {
    %c0_i32 = arith.constant 0 : i32
    %c0_i32_0 = arith.constant 0 : i32
    %c0_i32_1 = arith.constant 0 : i32
    return %c0_i32, %c0_i32_0 : i32, i32
  }
  func.func @transform_9(%arg0: i32) -> (i32, i32) {
    %c0_i32 = arith.constant 0 : i32
    %c0_i32_0 = arith.constant 0 : i32
    %c0_i32_1 = arith.constant 0 : i32
    return %c0_i32, %c0_i32_0 : i32, i32
  }
}

</mosaic_0001>

<bundles_post_ra>
// kernel: apan_forward.2
= control target key start
LH: loop header
LB: loop body
LE: loop exit
PB: predicated region body
PF: predicated region fallthrough
CT: control target
= control target key end

     0   :  { %vm37_vm0 = vcmask 523264   ;;  %vm81_vm1 = vcmask 261120   ;;  %s184_s1 = inlined_call_operand.vmem [shape: f32[192,32], index: 1, kind: input, shape index: {}]   ;;  %s185_s0 = inlined_call_operand.vmem [shape: f32[8,192], index: 0, kind: input, shape index: {}]   ;;  %s186_s2 = inlined_call_operand.vmem [shape: f32[8,32], index: 2, kind: output, shape index: {}]  }
   0x1   :  { %v28_v0 = vld [vmem:[%s184_s1 + $0x78] sm:$0xff]  ;;  %v27_v1 = vld [vmem:[%s184_s1 + $0x70] sm:$0xff]  ;;  %v26_v2 = vld [vmem:[%s184_s1 + $0x68] sm:$0xff] }
   0x2   :  { %41 = vmatpush.msra.mxu0 %v28_v0  ;;  %v36_v3 = vld [vmem:[%s184_s1 + $0xb8] sm:$0xff]  ;;  %v35_v4 = vld [vmem:[%s184_s1 + $0xb0] sm:$0xff]  ;;  %v25_v5 = vld [vmem:[%s184_s1 + $0x60] sm:$0xff] }
   0x3   :  { %69 = vmatpush.msra.mxu1 %v36_v3  ;;  %v34_v6 = vld [vmem:[%s184_s1 + $0xa8] sm:$0xff]  ;;  %v24_v7 = vld [vmem:[%s184_s1 + $0x58] sm:$0xff]  ;;  %v33_v8 = vld [vmem:[%s184_s1 + $0xa0] sm:$0xff] }
   0x4   :  { %42 = vmatpush.msra.mxu0 %v27_v1  ;;  %v23_v9 = vld [vmem:[%s184_s1 + $0x50] sm:$0xff]  ;;  %v32_v10 = vld [vmem:[%s184_s1 + $0x98] sm:$0xff]  ;;  %v22_v11 = vld [vmem:[%s184_s1 + $0x48] sm:$0xff] }
   0x5   :  { %70 = vmatpush.msra.mxu1 %v35_v4  ;;  %v31_v12 = vld [vmem:[%s184_s1 + $0x90] sm:$0xff]  ;;  %v21_v13 = vld [vmem:[%s184_s1 + $0x40] sm:$0xff]  ;;  %v30_v14 = vld [vmem:[%s184_s1 + $0x88] sm:$0xff] }
   0x6   :  { %43 = vmatpush.msra.mxu0 %v26_v2  ;;  %v20_v15 = vld [vmem:[%s184_s1 + $0x38] sm:$0xff]  ;;  %v29_v16 = vld [vmem:[%s184_s1 + $0x80] sm:$0xff]  ;;  %v19_v17 = vld [vmem:[%s184_s1 + $0x30] sm:$0xff] }
   0x7   :  { %71 = vmatpush.msra.mxu1 %v34_v6  ;;  %v12_v18 = vld [vmem:[%s185_s0 + $0x8] sm:$0xff]  ;;  %v17_v20 = vld [vmem:[%s184_s1 + $0x20] sm:$0xff]  ;;  %v16_v21 = vld [vmem:[%s184_s1 + $0x18] sm:$0xff] }
   0x8   :  { %44 = vmatpush.msra.mxu0 %v25_v5  ;;  %v18_v19 = vld [vmem:[%s184_s1 + $0x28] sm:$0xff]  ;;  %v15_v22 = vld [vmem:[%s184_s1 + $0x10] sm:$0xff]  ;;  %v13_v24 = vld [vmem:[%s184_s1] sm:$0xff] }
   0x9   :  { %72 = vmatpush.msra.mxu1 %v33_v8  ;;  %v14_v23 = vld [vmem:[%s184_s1 + $0x8] sm:$0xff]  ;;  %v11_v25 = vld [vmem:[%s185_s0] sm:$0xff] }
   0xa   :  { %45 = vmatpush.msra.mxu0 %v24_v7 }
   0xb   :  { %73 = vmatpush.msra.mxu1 %v32_v10 }
   0xc   :  { %46 = vmatpush.msra.mxu0 %v23_v9 }
   0xd   :  { %74 = vmatpush.msra.mxu1 %v31_v12 }
   0xe   :  { %47 = vmatpush.msra.mxu0 %v22_v11 }
   0xf   :  { %75 = vmatpush.msra.mxu1 %v30_v14 }
  0x10   :  { %48 = vmatpush.msra.mxu0 %v21_v13 }
  0x11   :  { %76 = vmatpush.msra.mxu1 %v29_v16 }
  0x12   :  { %49 = vmatpush.msra.mxu0 %v20_v15  ;;  %87 = vmatmul.msk.f32.vlgmr.msra.gmra.mxu1 %vm37_vm0, %v12_v18 }
  0x14   :  { %50 = vmatpush.msra.mxu0 %v19_v17 }
  0x16   :  { %51 = vmatpush.msra.mxu0 %v18_v19 }
  0x18   :  { %52 = vmatpush.msra.mxu0 %v17_v20 }
  0x1a   :  { %53 = vmatpush.msra.mxu0 %v16_v21 }
  0x1c   :  { %54 = vmatpush.msra.mxu0 %v15_v22 }
  0x1e   :  { %55 = vmatpush.msra.mxu0 %v14_v23 }
  0x20   :  { %56 = vmatpush.msra.mxu0 %v13_v24 }
  0x21   :  { %57 = vmatmul.f32.vlgmr.msra.gmra.mxu0 %v11_v25 }
  0x8f   :  { %v78_v26 = vpop.f32.mrf.mxu1 }
  0x9e   :  { %v58_v27 = vpop.f32.mrf.mxu0 }
  0x9f   :  { %v79_v28 = vadd.f32 %v78_v26, %v58_v27 }
  0xa1   :  { %82 = vst.msk [vmem:[%s186_s2] sm:$0xff] %vm81_vm1, %v79_v28 }

// kernel: apan_forward.3
= control target key start
LH: loop header
LB: loop body
LE: loop exit
PB: predicated region body
PF: predicated region fallthrough
CT: control target
= control target key end

     0   :  { %vm102_vm0 = vcmask 31744   ;;  %vm34_vm1 = vcmask 261120   ;;  %vm251_vm8 = vcmask 25600   ;;  %vm629_vm12 = vcmask 130048   ;;  %s1341_s29 = smov 64   ;;  %s1344_s14 = smov 16   ;;  %s1964_s5 = inlined_call_operand.vmem [shape: f32[32,96], index: 5, kind: input, shape index: {}]   ;;  %s1965_s2 = inlined_call_operand.vmem [shape: f32[2,32,4], index: 2, kind: input, shape index: {}]   ;;  %s1966_s4 = inlined_call_operand.vmem [shape: f32[10,32], index: 4, kind: input, shape index: {}]   ;;  %s1967_s1 = inlined_call_operand.vmem [shape: f32[8,32], index: 1, kind: input, shape index: {}]   ;;  %s1968_s0 = inlined_call_operand.vmem [shape: f32[2,32], index: 0, kind: input, shape index: {}]   ;;  %s1969_s6 = inlined_call_operand.vmem [shape: f32[32,144], index: 6, kind: input, shape index: {}]   ;;  %s1970_s3 = inlined_call_operand.vmem [shape: f32[2,48,16], index: 3, kind: input, shape index: {}]   ;;  %s1971_s7 = inlined_call_operand.vmem [shape: f32[10,8], index: 7, kind: input, shape index: {}]   ;;  %s1972_s8 = inlined_call_operand.vmem [shape: f32[1,8], index: 8, kind: input, shape index: {}]   ;;  %s1973_s9 = inlined_call_operand.vmem [shape: f32[2,24], index: 9, kind: output, shape index: {}]  }
   0x1   :  { %v93_v0 = vld [vmem:[%s1964_s5 + $0x18] sm:$0xff]  ;;  %v92_v1 = vld [vmem:[%s1964_s5 + $0x10] sm:$0xff]  ;;  %v91_v2 = vld [vmem:[%s1964_s5 + $0x8] sm:$0xff] }
   0x2   :  { %177 = vmatpush.msra.mxu1 %v93_v0  ;;  %v1407_v3 = vld [vmem:[%s1965_s2] sm:$0xff]  ;;  %v1412_v4 = vld [vmem:[%s1965_s2 + $0x8] sm:$0xff]  ;;  %v1417_v5 = vld [vmem:[%s1965_s2 + $0x10] sm:$0xff] }
   0x3   :  { %v85_v6 = vld [vmem:[%s1965_s2 + $0x18] sm:$0xff]  ;;  %v94_v7 = vmul.f32 %v1407_v3, %v1407_v3  ;;  %v95_v8 = vmul.f32 %v1412_v4, %v1412_v4  ;;  %v96_v9 = vmul.f32 %v1417_v5, %v1417_v5  ;;  %v90_v10 = vld [vmem:[%s1964_s5] sm:$0xff]  ;;  %v1445_v21 = vld [vmem:[%s1966_s4 + $0x8] sm:$0x3] }
   0x4   :  { %178 = vmatpush.msra.mxu1 %v92_v1  ;;  %v97_v11 = vmul.f32 %v85_v6, %v85_v6  ;;  %v1434_v12 = vld [vmem:[%s1966_s4] sm:$0xff]  ;;  %v87_v24 = vld [vmem:[%s1965_s2 + $0x28] sm:$0xff]  ;;  %v88_v25 = vld [vmem:[%s1965_s2 + $0x30] sm:$0xff] }
   0x5   :  { %v103_v13 = vsel %vm102_vm0, %v94_v7, 0.0  ;;  %v104_v14 = vsel %vm102_vm0, %v95_v8, 0.0  ;;  %v106_v15 = vsel %vm102_vm0, %v96_v9, 0.0  ;;  %v1450_v23 = vld [vmem:[%s1965_s2 + $0x20] sm:$0xff]  ;;  %v89_v26 = vld [vmem:[%s1965_s2 + $0x38] sm:$0xff]  ;;  %v99_v28 = vmul.f32 %v87_v24, %v87_v24  ;;  %s1339_s2 = smov 96  }
   0x6   :  { %179 = vmatpush.msra.mxu1 %v91_v2  ;;  %v105_v16 = vadd.f32 %v104_v14, %v103_v13  ;;  %v108_v17 = vsel %vm102_vm0, %v97_v11, 0.0  ;;  %v98_v27 = vmul.f32 %v1450_v23, %v1450_v23  ;;  %v100_v29 = vmul.f32 %v88_v25, %v88_v25  ;;  %v32_v13 = vld [vmem:[%s1967_s1] sm:$0xff] }
   0x7   :  { %v101_v31 = vmul.f32 %v89_v26, %v89_v26  ;;  %v117_v33 = vsel %vm102_vm0, %v99_v28, 0.0  ;;  %v33_v14 = vmul.f32 %v32_v13, %v32_v13 }
   0x8   :  { %180 = vmatpush.msra.mxu1 %v90_v10  ;;  %v107_v18 = vadd.f32 %v106_v15, %v105_v16  ;;  %v116_v32 = vsel %vm102_vm0, %v98_v27, 0.0  ;;  %v119_v34 = vsel %vm102_vm0, %v100_v29, 0.0 }
   0x9   :  { %1201 = vmatmul.msk.f32.vlgmr.msra.gmra.mxu1 %vm34_vm1, %v1434_v12  ;;  %v118_v36 = vadd.f32 %v117_v33, %v116_v32  ;;  %v121_v37 = vsel %vm102_vm0, %v101_v31, 0.0  ;;  %v35_v15 = vsel %vm34_vm1, %v33_v14, 0.0  ;;  %v614_v14 = vld [vmem:[%s1969_s6 + $0x28] sm:$0xff] }
   0xa   :  { %v109_v19 = vadd.f32 %v108_v17, %v107_v18  ;;  %36 = vadd.xlane.f32.xlu2 %v35_v15 }
   0xb   :  { %v120_v39 = vadd.f32 %v119_v34, %v118_v36 }
   0xc   :  { %v110_v20 = vrot.slane %v109_v19, 4 }
   0xd   :  { %v122_v41 = vadd.f32 %v121_v37, %v120_v39 }
   0xe   :  { %v111_v22 = vadd.f32 %v110_v20, %v109_v19 }
   0xf   :  { %v123_v43 = vrot.slane %v122_v41, 4 }
  0x10   :  { %v112_v30 = vrot.slane %v111_v22, 2 }
  0x11   :  { %1202 = vmatmul.msk.f32.gmra.mxu1 %vm34_vm1, %v1445_v21  ;;  %v124_v44 = vadd.f32 %v123_v43, %v122_v41 }
  0x12   :  { %v113_v35 = vadd.f32 %v112_v30, %v111_v22 }
  0x13   :  { %v125_v45 = vrot.slane %v124_v44, 2 }
  0x14   :  { %v114_v38 = vrot.slane %v113_v35, 1 }
  0x15   :  { %v126_v46 = vadd.f32 %v125_v45, %v124_v44 }
  0x16   :  { %v115_v40 = vadd.f32 %v114_v38, %v113_v35 }
  0x17   :  { %v127_v48 = vrot.slane %v126_v46, 1 }
  0x18   :  { %v129_v42 = vmax.f32 %v115_v40, 1e-24 }
  0x19   :  { %v128_v50 = vadd.f32 %v127_v48, %v126_v46 }
  0x1a   :  { %1265 = vrsqrt.f32 %v129_v42  ;;  %vm137_vm2 = vweird.f32 %v129_v42 }
  0x1b   :  { %v130_v52 = vmax.f32 %v128_v50, 1e-24 }
  0x1d   :  { %1267 = vrsqrt.f32 %v130_v52  ;;  %vm147_vm5 = vweird.f32 %v130_v52 }
  0x20   :  { %v1266_v47 = vpop.eup %1265 }
  0x21   :  { %v132_v49 = vmul.f32 %v1266_v47, %v129_v42  ;;  %vm138_vm3 = vweird.f32 %v1266_v47 }
  0x22   :  { %vm139_vm4 = vmor %vm137_vm2, %vm138_vm3 }
  0x23   :  { %v133_v51 = vmul.f32 %v1266_v47, %v132_v49  ;;  %v1268_v57 = vpop.eup %1267 }
  0x24   :  { %v142_v60 = vmul.f32 %v1268_v57, %v130_v52  ;;  %vm148_vm6 = vweird.f32 %v1268_v57  ;;  %v50_v52 = vld [vmem:[%s1968_s0] sm:$0x3] }
  0x25   :  { %v134_v53 = vmul.f32 0.5, %v133_v51  ;;  %vm149_vm7 = vmor %vm147_vm5, %vm148_vm6  ;;  %vm744_vm5 = vcmask 392192   ;;  %vm808_vm6 = vcmask 123904  }
  0x26   :  { %v143_v62 = vmul.f32 %v1268_v57, %v142_v60 }
  0x27   :  { %v135_v54 = vsub.f32 1.5, %v134_v53  ;;  %v615_v53 = vld [vmem:[%s1969_s6 + $0x30] sm:$0xff] }
  0x28   :  { %v144_v63 = vmul.f32 0.5, %v143_v62 }
  0x29   :  { %v136_v55 = vmul.f32 %v1266_v47, %v135_v54  ;;  %v613_v54 = vld [vmem:[%s1969_s6 + $0x20] sm:$0xff] }
  0x2a   :  { %v145_v0 = vsub.f32 1.5, %v144_v63 }
  0x2b   :  { %v140_v56 = vsel %vm139_vm4, %v1266_v47, %v136_v55  ;;  %v611_v55 = vld [vmem:[%s1969_s6 + $0x10] sm:$0xff] }
  0x2c   :  { %v1469_v58 = vmul.f32 %v140_v56, %v85_v6  ;;  %v1472_v59 = vmul.f32 %v140_v56, %v1417_v5  ;;  %v1476_v61 = vmul.f32 %v140_v56, %v1412_v4  ;;  %v146_v1 = vmul.f32 %v1268_v57, %v145_v0 }
  0x2d   :  { %v1484_v7 = vmul.f32 %v140_v56, %v1407_v3  ;;  %v609_v56 = vld [vmem:[%s1969_s6] sm:$0xff] }
  0x2e   :  { %206 = vmatpush.msra.mxu2 %v1469_v58  ;;  %237 = vmatpush.msra.mxu3 %v1469_v58  ;;  %v150_v2 = vsel %vm149_vm7, %v1268_v57, %v146_v1  ;;  %vm341_vm7 = vcmask 254976  }
  0x2f   :  { %v158_v4 = vmul.f32 %v150_v2, %v89_v26  ;;  %v157_v5 = vmul.f32 %v150_v2, %v88_v25  ;;  %v156_v6 = vmul.f32 %v150_v2, %v87_v24  ;;  %v155_v8 = vmul.f32 %v150_v2, %v1450_v23 }
  0x30   :  { %207 = vmatpush.msra.mxu2 %v1472_v59  ;;  %238 = vmatpush.msra.mxu3 %v1472_v59 }
  0x31   :  { %411 = vmatpush.msrb.mxu1 %v158_v4 }
  0x32   :  { %208 = vmatpush.msra.mxu2 %v1476_v61  ;;  %239 = vmatpush.msra.mxu3 %v1476_v61 }
  0x33   :  { %412 = vmatpush.msrb.mxu1 %v157_v5 }
  0x34   :  { %209 = vmatpush.msra.mxu2 %v1484_v7  ;;  %240 = vmatpush.msra.mxu3 %v1484_v7 }
  0x35   :  { %413 = vmatpush.msrb.mxu1 %v156_v6 }
  0x36   :  { %434 = vmatpush.msrb.mxu2 %v158_v4  ;;  %1219 = vmatpush.xpose.msk.msrb.mxu3 %vm102_vm0, %v158_v4 }
  0x37   :  { %414 = vmatpush.msrb.mxu1 %v155_v8 }
  0x38   :  { %435 = vmatpush.msrb.mxu2 %v157_v5 }
  0x3a   :  { %436 = vmatpush.msrb.mxu2 %v156_v6  ;;  %1220 = vmatpush.xpose.msk.msrb.mxu3 %vm102_vm0, %v157_v5 }
  0x3c   :  { %437 = vmatpush.msrb.mxu2 %v155_v8 }
  0x3e   :  { %1221 = vmatpush.xpose.msk.msrb.mxu3 %vm102_vm0, %v156_v6 }
  0x42   :  { %1222 = vmatpush.xpose.msk.msrb.mxu3 %vm102_vm0, %v155_v8  ;;  %v1576_v8 = vld [vmem:[%s1970_s3] sm:$0xff] }
  0x43   :  { %v617_v15 = vmul.f32 %v1576_v8, %v1576_v8 }
  0x7d   :  { %v37_v25 = vpop.xlane.xlu2 %36 }
  0x7e   :  { %v38_v26 = vmax.f32 %v37_v25, 1e-24 }
  0x80   :  { %1269 = vrsqrt.f32 %v38_v26  ;;  %vm45_vm9 = vweird.f32 %v38_v26 }
  0x86   :  { %v1493_v3 = vpop.f32.mrf.mxu1  ;;  %v1270_v30 = vpop.eup %1269 }
  0x87   :  { %217 = vrot.lane.b32.xlu0 %v1493_v3, %s1339_s2  ;;  %1203 = vmatmul.msk.f32.vlgmr.msra.gmra.mxu2 %vm34_vm1, %v1493_v3  ;;  %v40_v31 = vmul.f32 %v1270_v30, %v38_v26  ;;  %vm46_vm10 = vweird.f32 %v1270_v30  ;;  %v630_v26 = vsel %vm629_vm12, %v617_v15, 0.0 }
  0x88   :  { %1215 = vmatmul.msk.f32.vlgmr.msrb.gmra.mxu1 %vm34_vm1, %v1493_v3  ;;  %vm47_vm11 = vmor %vm45_vm9, %vm46_vm10  ;;  %vm914_vm9 = vcmask 386048  }
  0x89   :  { %v41_v34 = vmul.f32 %v1270_v30, %v40_v31  ;;  %v1632_v31 = vld [vmem:[%s1970_s3 + $0x48] sm:$0xff] }
  0x8b   :  { %v42_v37 = vmul.f32 0.5, %v41_v34 }
  0x8d   :  { %v43_v39 = vsub.f32 1.5, %v42_v37 }
  0x8e   :  { %v1501_v9 = vpop.f32.mrf.mxu1 }
  0x8f   :  { %219 = vrot.lane.b32.xlu0 %v1501_v9, %s1339_s2  ;;  %1204 = vmatmul.msk.f32.gmra.mxu2 %vm34_vm1, %v1501_v9  ;;  %v44_v40 = vmul.f32 %v1270_v30, %v43_v39 }
  0x90   :  { %1216 = vmatmul.msk.f32.gmra.mxu1 %vm34_vm1, %v1501_v9 }
  0x91   :  { %v48_v44 = vsel %vm47_vm11, %v1270_v30, %v44_v40  ;;  %v1651_v40 = vld [vmem:[%s1970_s3 + $0x50] sm:$0xff] }
  0x92   :  { %v49_v45 = vmul.f32 %v48_v44, %v32_v13  ;;  %v616_v13 = vld [vmem:[%s1969_s6 + $0x38] sm:$0xff] }
  0x93   :  { %733 = vmatpush.msra.mxu1 %v616_v13 }
  0x94   :  { %1199 = vmatpush.xpose.msk.msra.mxu0 %vm34_vm1, %v49_v45  ;;  %v627_v45 = vmul.f32 %v1651_v40, %v1651_v40 }
  0x95   :  { %734 = vmatpush.msra.mxu1 %v614_v14 }
  0x97   :  { %1200 = vmatmul.msk.f32.vlgmr.msra.gmra.mxu0 %vm34_vm1, %v50_v52 }
  0x98   :  { %1207 = vmatpush.xpose.msk.msrb.mxu0 %vm102_vm0, %v1469_v58 }
  0x9c   :  { %1208 = vmatpush.xpose.msk.msrb.mxu0 %vm102_vm0, %v1472_v59 }
  0xa0   :  { %1209 = vmatpush.xpose.msk.msrb.mxu0 %vm102_vm0, %v1476_v61 }
  0xa4   :  { %1210 = vmatpush.xpose.msk.msrb.mxu0 %vm102_vm0, %v1484_v7 }
  0xa8   :  { %710 = vmatpush.msra.mxu0 %v615_v53 }
  0xaa   :  { %711 = vmatpush.msra.mxu0 %v613_v54  ;;  %v654_v54 = vsel %vm629_vm12, %v627_v45, 0.0 }
  0xac   :  { %712 = vmatpush.msra.mxu0 %v611_v55 }
  0xae   :  { %713 = vmatpush.msra.mxu0 %v609_v56 }
  0xf9   :  { %v218_v10 = vpop.permute.xlu0 %217 }
  0xfa   :  { %1205 = vmatmul.msk.f32.vlgmr.msra.gmra.mxu3 %vm34_vm1, %v218_v10  ;;  %1217 = vmatmul.msk.f32.vlgmr.msrb.gmra.mxu2 %vm34_vm1, %v218_v10  ;;  %v1581_v10 = vld [vmem:[%s1970_s3 + $0x8] sm:$0xff] }
 0x101   :  { %v220_v11 = vpop.permute.xlu0 %219 }
 0x102   :  { %1206 = vmatmul.msk.f32.gmra.mxu3 %vm34_vm1, %v220_v11  ;;  %1218 = vmatmul.msk.f32.gmra.mxu2 %vm34_vm1, %v220_v11  ;;  %v1586_v11 = vld [vmem:[%s1970_s3 + $0x30] sm:$0xff] }
 0x10a   :  { %v1517_v16 = vpop.f32.mrf.mxu2 }
 0x112   :  { %v1520_v19 = vpop.f32.mrf.mxu2 }
 0x17d   :  { %v242_v17 = vpop.f32.mrf.mxu3  ;;  %v439_v23 = vpop.f32.mrf.mxu2 }
 0x17e   :  { %v248_v18 = vsel %vm102_vm0, %v242_v17, -inf  ;;  %v445_v24 = vsel %vm102_vm0, %v439_v23, -inf }
 0x17f   :  { %249 = vmax.xlane.f32.xlu1 %v248_v18  ;;  %v623_v18 = vmul.f32 %v1586_v11, %v1586_v11 }
 0x185   :  { %v245_v20 = vpop.f32.mrf.mxu3  ;;  %v442_v42 = vpop.f32.mrf.mxu2 }
 0x186   :  { %v252_v22 = vsel %vm251_vm8, %v245_v20, -inf  ;;  %v448_v49 = vsel %vm251_vm8, %v442_v42, -inf }
 0x187   :  { %253 = vmax.xlane.f32.xlu1 %v252_v22  ;;  %v1608_v22 = vld [vmem:[%s1970_s3 + $0x38] sm:$0xff] }
 0x18f   :  { %446 = vmax.xlane.f32.xlu1 %v445_v24  ;;  %v612_v24 = vld [vmem:[%s1969_s6 + $0x18] sm:$0xff] }
 0x190   :  { %735 = vmatpush.msra.mxu1 %v612_v24 }
 0x1f2   :  { %v250_v27 = vpop.xlane.xlu1 %249 }
 0x1f3   :  { %v255_v28 = vsub.f32 %v242_v17, %v250_v27  ;;  %v618_v17 = vmul.f32 %v1581_v10, %v1581_v10 }
 0x1f5   :  { %v257_v29 = vmul.f32 1.442695, %v255_v28  ;;  %v631_v27 = vsel %vm629_vm12, %v618_v17, 0.0  ;;  %v624_v28 = vmul.f32 %v1608_v22, %v1608_v22 }
 0x1f6   :  { %v632_v30 = vadd.f32 %v631_v27, %v630_v26 }
 0x1f7   :  { %1271 = vpow2.f32 %v257_v29  ;;  %v1627_v29 = vld [vmem:[%s1970_s3 + $0x18] sm:$0xff]  ;;  %v648_v37 = vsel %vm629_vm12, %v624_v28, 0.0 }
 0x1f8   :  { %v620_v34 = vmul.f32 %v1627_v29, %v1627_v29 }
 0x1fa   :  { %v254_v32 = vpop.xlane.xlu1 %253  ;;  %v635_v44 = vsel %vm629_vm12, %v620_v34, 0.0 }
 0x1fb   :  { %v256_v33 = vsub.f32 %v245_v20, %v254_v32  ;;  %v1603_v20 = vld [vmem:[%s1970_s3 + $0x10] sm:$0xff] }
 0x1fc   :  { %v619_v25 = vmul.f32 %v1603_v20, %v1603_v20 }
 0x1fd   :  { %v1272_v35 = vpop.eup %1271  ;;  %v259_v36 = vmul.f32 1.442695, %v256_v33  ;;  %v647_v33 = vsel %vm629_vm12, %v623_v18, 0.0 }
 0x1fe   :  { %v261_v38 = vsel %vm102_vm0, %v1272_v35, 0.0 }
 0x1ff   :  { %1273 = vpow2.f32 %v259_v36  ;;  %262 = vadd.xlane.f32.xlu2 %v261_v38  ;;  %v626_v36 = vmul.f32 %v1632_v31, %v1632_v31  ;;  %v1646_v38 = vld [vmem:[%s1970_s3 + $0x20] sm:$0xff] }
 0x202   :  { %v447_v41 = vpop.xlane.xlu1 %446 }
 0x203   :  { %v451_v43 = vsub.f32 %v439_v23, %v447_v41  ;;  %v1613_v23 = vld [vmem:[%s1970_s3 + $0x40] sm:$0xff]  ;;  %v649_v41 = vadd.f32 %v648_v37, %v647_v33  ;;  %v610_v37 = vld [vmem:[%s1969_s6 + $0x8] sm:$0xff]  ;;  %s1340_s6 = smov 80  }
 0x204   :  { %v625_v32 = vmul.f32 %v1613_v23, %v1613_v23  ;;  %736 = vmatpush.msra.mxu1 %v610_v37 }
 0x205   :  { %v1274_v46 = vpop.eup %1273  ;;  %v453_v47 = vmul.f32 1.442695, %v451_v43  ;;  %v621_v43 = vmul.f32 %v1646_v38, %v1646_v38  ;;  %1229 = vmatmul.msk.f32.vlgmr.msra.gmra.mxu1 %vm34_vm1, %v1434_v12 }
 0x206   :  { %v264_v48 = vsel %vm251_vm8, %v1274_v46, 0.0 }
 0x207   :  { %1275 = vpow2.f32 %v453_v47  ;;  %265 = vadd.xlane.f32.xlu0 %v264_v48  ;;  %449 = vmax.xlane.f32.xlu2 %v448_v49  ;;  %v602_v47 = vld [vmem:[%s1970_s3 + $0x28] sm:$0xff]  ;;  %v608_v49 = vld [vmem:[%s1970_s3 + $0x58] sm:$0xff]  ;;  %v637_v52 = vsel %vm629_vm12, %v621_v43, 0.0 }
 0x208   :  { %v628_v53 = vmul.f32 %v608_v49, %v608_v49 }
 0x20d   :  { %v1276_v50 = vpop.eup %1275  ;;  %1230 = vmatmul.msk.f32.gmra.mxu1 %vm34_vm1, %v1445_v21 }
 0x20e   :  { %v457_v51 = vsel %vm102_vm0, %v1276_v50, 0.0 }
 0x20f   :  { %458 = vadd.xlane.f32.xlu1 %v457_v51  ;;  %v622_v51 = vmul.f32 %v602_v47, %v602_v47 }
 0x272   :  { %v263_v57 = vpop.xlane.xlu2 %262 }
 0x273   :  { %1277 = vrcp.f32 %v263_v57  ;;  %v639_v57 = vsel %vm629_vm12, %v622_v51, 0.0 }
 0x279   :  { %v1278_v58 = vpop.eup %1277 }
 0x27a   :  { %v266_v59 = vpop.xlane.xlu0 %265  ;;  %v450_v60 = vpop.xlane.xlu2 %449  ;;  %v1553_v61 = vmul.f32 %v1278_v58, %v1272_v35  ;;  %v633_v35 = vsel %vm629_vm12, %v619_v25, 0.0  ;;  %v656_v58 = vsel %vm629_vm12, %v628_v53, 0.0 }
 0x27b   :  { %1279 = vrcp.f32 %v266_v59  ;;  %v452_v62 = vsub.f32 %v442_v42, %v450_v60  ;;  %v634_v39 = vadd.f32 %v633_v35, %v632_v30  ;;  %v650_v42 = vsel %vm629_vm12, %v625_v32, 0.0 }
 0x27c   :  { %1211 = vmatmul.msk.f32.vlgmr.msrb.gmra.mxu0 %vm102_vm0, %v1553_v61 }
 0x27d   :  { %v455_v63 = vmul.f32 1.442695, %v452_v62  ;;  %v636_v48 = vadd.f32 %v635_v44, %v634_v39 }
 0x27f   :  { %1281 = vpow2.f32 %v455_v63  ;;  %v638_v55 = vadd.f32 %v637_v52, %v636_v48 }
 0x281   :  { %v1280_v0 = vpop.eup %1279  ;;  %v640_v59 = vadd.f32 %v639_v57, %v638_v55 }
 0x282   :  { %v459_v1 = vpop.xlane.xlu1 %458  ;;  %v1557_v2 = vmul.f32 %v1280_v0, %v1274_v46  ;;  %v652_v46 = vsel %vm629_vm12, %v626_v36, 0.0 }
 0x283   :  { %1283 = vrcp.f32 %v459_v1  ;;  %v641_v62 = vrot.slane %v640_v59, 4 }
 0x284   :  { %1212 = vmatmul.msk.f32.gmra.mxu0 %vm102_vm0, %v1557_v2 }
 0x285   :  { %v1561_v4 = vpop.eup %1281  ;;  %v642_v0 = vadd.f32 %v641_v62, %v640_v59 }
 0x286   :  { %v460_v5 = vsel %vm251_vm8, %v1561_v4, 0.0 }
 0x287   :  { %461 = vadd.xlane.f32.xlu2 %v460_v5  ;;  %v643_v5 = vrot.slane %v642_v0, 2 }
 0x289   :  { %v1284_v6 = vpop.eup %1283  ;;  %v644_v13 = vadd.f32 %v643_v5, %v642_v0 }
 0x28a   :  { %v1565_v7 = vmul.f32 %v1284_v6, %v1276_v50  ;;  %v651_v50 = vadd.f32 %v650_v42, %v649_v41 }
 0x28b   :  { %v645_v15 = vrot.slane %v644_v13, 1 }
 0x28c   :  { %1223 = vmatmul.msk.f32.vlgmr.msrb.gmra.mxu3 %vm102_vm0, %v1565_v7  ;;  %1227 = vmatmul.msk.f32.vlgmr.msra.gmra.mxu0 %vm34_vm1, %v1434_v12  ;;  %v653_v56 = vadd.f32 %v652_v46, %v651_v50 }
 0x28d   :  { %v646_v18 = vadd.f32 %v645_v15, %v644_v13 }
 0x28e   :  { %v655_v60 = vadd.f32 %v654_v54, %v653_v56 }
 0x28f   :  { %v664_v25 = vmax.f32 %v646_v18, 1e-24 }
 0x290   :  { %v657_v63 = vadd.f32 %v656_v58, %v655_v60 }
 0x291   :  { %1285 = vrsqrt.f32 %v664_v25  ;;  %vm672_vm13 = vweird.f32 %v664_v25 }
 0x292   :  { %v658_v1 = vrot.slane %v657_v63, 4 }
 0x294   :  { %1228 = vmatmul.msk.f32.gmra.mxu0 %vm34_vm1, %v1445_v21  ;;  %v659_v6 = vadd.f32 %v658_v1, %v657_v63 }
 0x296   :  { %v660_v14 = vrot.slane %v659_v6, 2 }
 0x297   :  { %v1286_v28 = vpop.eup %1285 }
 0x298   :  { %v661_v17 = vadd.f32 %v660_v14, %v659_v6  ;;  %v667_v30 = vmul.f32 %v1286_v28, %v664_v25  ;;  %vm673_vm14 = vweird.f32 %v1286_v28 }
 0x299   :  { %vm674_vm15 = vmor %vm672_vm13, %vm673_vm14 }
 0x29a   :  { %v662_v24 = vrot.slane %v661_v17, 1  ;;  %v668_v33 = vmul.f32 %v1286_v28, %v667_v30 }
 0x29c   :  { %v663_v26 = vadd.f32 %v662_v24, %v661_v17  ;;  %v669_v35 = vmul.f32 0.5, %v668_v33 }
 0x29e   :  { %v665_v27 = vmax.f32 %v663_v26, 1e-24  ;;  %v670_v39 = vsub.f32 1.5, %v669_v35 }
 0x2a0   :  { %1287 = vrsqrt.f32 %v665_v27  ;;  %v671_v42 = vmul.f32 %v1286_v28, %v670_v39  ;;  %vm682_vm2 = vweird.f32 %v665_v27 }
 0x2a2   :  { %v675_v44 = vsel %vm674_vm15, %v1286_v28, %v671_v42 }
 0x2a3   :  { %v691_v46 = vmul.f32 %v675_v44, %v602_v47  ;;  %v690_v51 = vmul.f32 %v675_v44, %v1646_v38  ;;  %v689_v12 = vmul.f32 %v675_v44, %v1627_v29  ;;  %v688_v47 = vmul.f32 %v675_v44, %v1603_v20 }
 0x2a4   :  { %v686_v21 = vmul.f32 %v675_v44, %v1576_v8 }
 0x2a5   :  { %761 = vmatpush.msra.mxu2 %v691_v46  ;;  %792 = vmatpush.msra.mxu3 %v691_v46 }
 0x2a6   :  { %v1288_v32 = vpop.eup %1287  ;;  %1235 = vmatpush.xpose.msk.msrb.mxu0 %vm629_vm12, %v691_v46 }
 0x2a7   :  { %v677_v34 = vmul.f32 %v1288_v32, %v665_v27  ;;  %vm683_vm3 = vweird.f32 %v1288_v32  ;;  %762 = vmatpush.msra.mxu2 %v690_v51  ;;  %793 = vmatpush.msra.mxu3 %v690_v51 }
 0x2a8   :  { %vm684_vm4 = vmor %vm682_vm2, %vm683_vm3 }
 0x2a9   :  { %v678_v36 = vmul.f32 %v1288_v32, %v677_v34  ;;  %763 = vmatpush.msra.mxu2 %v689_v12  ;;  %794 = vmatpush.msra.mxu3 %v689_v12 }
 0x2aa   :  { %1236 = vmatpush.xpose.msk.msrb.mxu0 %vm629_vm12, %v690_v51 }
 0x2ab   :  { %v679_v41 = vmul.f32 0.5, %v678_v36  ;;  %764 = vmatpush.msra.mxu2 %v688_v47  ;;  %795 = vmatpush.msra.mxu3 %v688_v47 }
 0x2ad   :  { %v680_v43 = vsub.f32 1.5, %v679_v41 }
 0x2ae   :  { %1237 = vmatpush.xpose.msk.msrb.mxu0 %vm629_vm12, %v689_v12 }
 0x2af   :  { %v681_v45 = vmul.f32 %v1288_v32, %v680_v43 }
 0x2b1   :  { %v685_v48 = vsel %vm684_vm4, %v1288_v32, %v681_v45 }
 0x2b2   :  { %v697_v50 = vmul.f32 %v685_v48, %v608_v49  ;;  %v696_v52 = vmul.f32 %v685_v48, %v1651_v40  ;;  %v695_v53 = vmul.f32 %v685_v48, %v1632_v31  ;;  %v694_v38 = vmul.f32 %v685_v48, %v1613_v23  ;;  %1238 = vmatpush.xpose.msk.msrb.mxu0 %vm629_vm12, %v688_v47 }
 0x2b3   :  { %v687_v40 = vmul.f32 %v675_v44, %v1581_v10  ;;  %v693_v29 = vmul.f32 %v685_v48, %v1608_v22  ;;  %v692_v31 = vmul.f32 %v685_v48, %v1586_v11  ;;  %v1692_v10 = vpop.f32.mrf.mxu0 }
 0x2b4   :  { %980 = vmatpush.msrb.mxu1 %v697_v50 }
 0x2b5   :  { %765 = vmatpush.msra.mxu2 %v687_v40  ;;  %796 = vmatpush.msra.mxu3 %v687_v40 }
 0x2b6   :  { %981 = vmatpush.msrb.mxu1 %v696_v52  ;;  %1239 = vmatpush.xpose.msk.msrb.mxu0 %vm629_vm12, %v687_v40 }
 0x2b7   :  { %766 = vmatpush.msra.mxu2 %v686_v21  ;;  %797 = vmatpush.msra.mxu3 %v686_v21 }
 0x2b8   :  { %982 = vmatpush.msrb.mxu1 %v695_v53 }
 0x2b9   :  { %1003 = vmatpush.msrb.mxu2 %v697_v50  ;;  %1249 = vmatpush.xpose.msk.msrb.mxu3 %vm629_vm12, %v697_v50 }
 0x2ba   :  { %983 = vmatpush.msrb.mxu1 %v694_v38  ;;  %1240 = vmatpush.xpose.msk.msrb.mxu0 %vm629_vm12, %v686_v21 }
 0x2bb   :  { %1004 = vmatpush.msrb.mxu2 %v696_v52 }
 0x2bc   :  { %984 = vmatpush.msrb.mxu1 %v693_v29 }
 0x2bd   :  { %1005 = vmatpush.msrb.mxu2 %v695_v53  ;;  %1250 = vmatpush.xpose.msk.msrb.mxu3 %vm629_vm12, %v696_v52 }
 0x2be   :  { %985 = vmatpush.msrb.mxu1 %v692_v31 }
 0x2bf   :  { %1006 = vmatpush.msrb.mxu2 %v694_v38 }
 0x2c1   :  { %1007 = vmatpush.msrb.mxu2 %v693_v29  ;;  %1251 = vmatpush.xpose.msk.msrb.mxu3 %vm629_vm12, %v695_v53 }
 0x2c3   :  { %1008 = vmatpush.msrb.mxu2 %v692_v31 }
 0x2c5   :  { %1252 = vmatpush.xpose.msk.msrb.mxu3 %vm629_vm12, %v694_v38 }
 0x2c9   :  { %1253 = vmatpush.xpose.msk.msrb.mxu3 %vm629_vm12, %v693_v29 }
 0x2cd   :  { %1254 = vmatpush.xpose.msk.msrb.mxu3 %vm629_vm12, %v692_v31 }
 0x2f9   :  { %v306_v8 = vpop.f32.mrf.mxu0 }
 0x2fa   :  { %v462_v11 = vpop.xlane.xlu2 %461 }
 0x2fb   :  { %1289 = vrcp.f32 %v462_v11 }
 0x301   :  { %v1290_v20 = vpop.eup %1289  ;;  %v1701_v22 = vpop.f32.mrf.mxu0 }
 0x302   :  { %v1704_v23 = vmul.f32 %v1290_v20, %v1561_v4 }
 0x304   :  { %1224 = vmatmul.msk.f32.gmra.mxu3 %vm102_vm0, %v1704_v23 }
 0x309   :  { %v1708_v49 = vpop.f32.mrf.mxu0 }
 0x30a   :  { %774 = vrot.lane.b32.xlu1 %v1708_v49, %s1340_s6  ;;  %1231 = vmatmul.msk.f32.vlgmr.msra.gmra.mxu2 %vm744_vm5, %v1708_v49 }
 0x30b   :  { %1245 = vmatmul.msk.f32.vlgmr.msrb.gmra.mxu1 %vm744_vm5, %v1708_v49 }
 0x30f   :  { %v502_v56 = vpop.f32.mrf.mxu3 }
 0x311   :  { %v1715_v54 = vpop.f32.mrf.mxu0 }
 0x312   :  { %776 = vrot.lane.b32.xlu2 %v1715_v54, %s1340_s6  ;;  %1232 = vmatmul.msk.f32.gmra.mxu2 %vm744_vm5, %v1715_v54 }
 0x313   :  { %1246 = vmatmul.msk.f32.gmra.mxu1 %vm744_vm5, %v1715_v54 }
 0x36c   :  { %v777_v55 = vpop.permute.xlu2 %776 }
 0x37c   :  { %v775_v4 = vpop.permute.xlu1 %774 }
 0x37d   :  { %1233 = vmatmul.msk.f32.vlgmr.msra.gmra.mxu3 %vm744_vm5, %v775_v4  ;;  %1247 = vmatmul.msk.f32.vlgmr.msrb.gmra.mxu2 %vm744_vm5, %v775_v4 }
 0x385   :  { %1248 = vmatmul.msk.f32.gmra.mxu2 %vm744_vm5, %v777_v55  ;;  %1234 = vmatmul.msk.f32.gmra.mxu3 %vm744_vm5, %v777_v55 }
 0x387   :  { %v505_v58 = vpop.f32.mrf.mxu3 }
 0x38d   :  { %v1726_v57 = vpop.f32.mrf.mxu2 }
 0x395   :  { %v1728_v59 = vpop.f32.mrf.mxu2 }
 0x400   :  { %v799_v60 = vpop.f32.mrf.mxu3  ;;  %v1010_v62 = vpop.f32.mrf.mxu2 }
 0x401   :  { %v805_v63 = vsel %vm629_vm12, %v799_v60, -inf  ;;  %v1016_v0 = vsel %vm629_vm12, %v1010_v62, -inf }
 0x402   :  { %806 = vmax.xlane.f32.xlu1 %v805_v63  ;;  %1017 = vmax.xlane.f32.xlu2 %v1016_v0 }
 0x408   :  { %v1013_v1 = vpop.f32.mrf.mxu2  ;;  %v802_v6 = vpop.f32.mrf.mxu3 }
 0x409   :  { %v1019_v5 = vsel %vm808_vm6, %v1013_v1, -inf  ;;  %v809_v13 = vsel %vm808_vm6, %v802_v6, -inf }
 0x40a   :  { %1020 = vmax.xlane.f32.xlu0 %v1019_v5 }
 0x412   :  { %810 = vmax.xlane.f32.xlu0 %v809_v13 }
 0x41b   :  { %520 = vrot.lane.b32.xlu1 %v505_v58, %s1341_s29 }
 0x423   :  { %322 = vrot.lane.b32.xlu1 %v306_v8, %s1341_s29 }
 0x475   :  { %v1018_v14 = vpop.xlane.xlu2 %1017  ;;  %v807_v15 = vpop.xlane.xlu1 %806 }
 0x476   :  { %v1022_v17 = vsub.f32 %v1010_v62, %v1018_v14  ;;  %v812_v24 = vsub.f32 %v799_v60, %v807_v15  ;;  %v416_v60 = vpop.f32.mrf.mxu1 }
 0x478   :  { %v1024_v18 = vmul.f32 1.442695, %v1022_v17  ;;  %v814_v25 = vmul.f32 1.442695, %v812_v24 }
 0x47a   :  { %1291 = vpow2.f32 %v1024_v18 }
 0x47b   :  { %1293 = vpow2.f32 %v814_v25 }
 0x47d   :  { %v1021_v26 = vpop.xlane.xlu0 %1020 }
 0x47e   :  { %v1023_v28 = vsub.f32 %v1013_v1, %v1021_v26  ;;  %v1769_v62 = vpop.f32.mrf.mxu1 }
 0x480   :  { %v1292_v27 = vpop.eup %1291  ;;  %v1026_v32 = vmul.f32 1.442695, %v1023_v28 }
 0x481   :  { %v1028_v30 = vsel %vm629_vm12, %v1292_v27, 0.0  ;;  %v1294_v35 = vpop.eup %1293 }
 0x482   :  { %1029 = vadd.xlane.f32.xlu0 %v1028_v30  ;;  %1295 = vpow2.f32 %v1026_v32  ;;  %v818_v37 = vsel %vm629_vm12, %v1294_v35, 0.0 }
 0x485   :  { %v811_v33 = vpop.xlane.xlu0 %810 }
 0x486   :  { %v813_v34 = vsub.f32 %v802_v6, %v811_v33  ;;  %v738_v63 = vpop.f32.mrf.mxu1 }
 0x488   :  { %v816_v36 = vmul.f32 1.442695, %v813_v34  ;;  %v1296_v39 = vpop.eup %1295 }
 0x489   :  { %v1031_v43 = vsel %vm808_vm6, %v1296_v39, 0.0 }
 0x48a   :  { %1297 = vpow2.f32 %v816_v36  ;;  %819 = vadd.xlane.f32.xlu0 %v818_v37 }
 0x48d   :  { %v521_v8 = vpop.permute.xlu1 %520 }
 0x48e   :  { %v525_v11 = vmul.f32 %v521_v8, %v1501_v9 }
 0x490   :  { %v1298_v41 = vpop.eup %1297 }
 0x491   :  { %v821_v42 = vsel %vm808_vm6, %v1298_v41, 0.0 }
 0x492   :  { %822 = vadd.xlane.f32.xlu2 %v821_v42  ;;  %1032 = vadd.xlane.f32.xlu0 %v1031_v43  ;;  %v508_v43 = vmul.f32 %v1565_v7, %v416_v60  ;;  %v312_v60 = vmul.f32 %v1553_v61, %v1517_v16 }
 0x4a6   :  { %518 = vrot.lane.b32.xlu0 %v502_v56, %s1341_s29  ;;  %v323_v56 = vpop.permute.xlu1 %322 }
 0x4a7   :  { %v328_v58 = vmul.f32 %v323_v56, %v1493_v3  ;;  %v509_v56 = vmul.f32 %v1704_v23, %v1769_v62 }
 0x4f5   :  { %v1030_v44 = vpop.xlane.xlu0 %1029 }
 0x4f6   :  { %1299 = vrcp.f32 %v1030_v44  ;;  %v510_v44 = vsel %vm102_vm0, %v508_v43, 0.0 }
 0x4fc   :  { %v1300_v45 = vpop.eup %1299 }
 0x4fd   :  { %v1741_v46 = vmul.f32 %v1300_v45, %v1292_v27  ;;  %v820_v48 = vpop.xlane.xlu0 %819 }
 0x4fe   :  { %1301 = vrcp.f32 %v820_v48 }
 0x4ff   :  { %1255 = vmatmul.msk.f32.vlgmr.msrb.gmra.mxu3 %vm629_vm12, %v1741_v46 }
 0x504   :  { %v1302_v50 = vpop.eup %1301 }
 0x505   :  { %v823_v51 = vpop.xlane.xlu2 %822  ;;  %v1745_v52 = vmul.f32 %v1302_v50, %v1294_v35  ;;  %v1033_v12 = vpop.xlane.xlu0 %1032 }
 0x506   :  { %1303 = vrcp.f32 %v823_v51 }
 0x507   :  { %1305 = vrcp.f32 %v1033_v12  ;;  %1241 = vmatmul.msk.f32.vlgmr.msrb.gmra.mxu0 %vm629_vm12, %v1745_v52  ;;  %v875_v7 = vmul.f32 %v1745_v52, %v1726_v57  ;;  %v513_v52 = vsel %vm251_vm8, %v509_v56, 0.0 }
 0x50c   :  { %v1304_v53 = vpop.eup %1303 }
 0x50d   :  { %v1306_v47 = vpop.eup %1305  ;;  %v1749_v38 = vmul.f32 %v1304_v53, %v1298_v41 }
 0x50e   :  { %v1751_v40 = vmul.f32 %v1306_v47, %v1296_v39 }
 0x50f   :  { %1242 = vmatmul.msk.f32.gmra.mxu0 %vm629_vm12, %v1749_v38  ;;  %v876_v23 = vmul.f32 %v1749_v38, %v1728_v59 }
 0x510   :  { %1256 = vmatmul.msk.f32.gmra.mxu3 %vm629_vm12, %v1751_v40 }
 0x511   :  { %v880_v62 = vsel %vm808_vm6, %v876_v23, 0.0 }
 0x518   :  { %v519_v4 = vpop.permute.xlu0 %518 }
 0x519   :  { %v524_v55 = vmul.f32 %v519_v4, %v1493_v3  ;;  %v741_v3 = vpop.f32.mrf.mxu1 }
 0x582   :  { %v1079_v29 = vpop.f32.mrf.mxu3 }
 0x583   :  { %1095 = vrot.lane.b32.xlu2 %v1079_v29, %s1339_s2 }
 0x584   :  { %v869_v21 = vpop.f32.mrf.mxu0 }
 0x58b   :  { %885 = vrot.lane.b32.xlu2 %v869_v21, %s1339_s2 }
 0x58c   :  { %v872_v31 = vpop.f32.mrf.mxu0 }
 0x58d   :  { %887 = vrot.lane.b32.xlu1 %v872_v31, %s1339_s2 }
 0x593   :  { %v1082_v20 = vpop.f32.mrf.mxu3  ;;  %530 = vrot.lane.b32.xlu2 %v525_v11, %s1341_s29 }
 0x594   :  { %1097 = vrot.lane.b32.xlu0 %v1082_v20, %s1339_s2  ;;  %s1342_s2 = smov 32   ;;  %v877_v20 = vsel %vm629_vm12, %v875_v7, 0.0 }
 0x59c   :  { %324 = vrot.lane.b32.xlu0 %v1701_v22, %s1341_s29 }
 0x5a4   :  { %528 = vrot.lane.b32.xlu0 %v524_v55, %s1341_s29 }
 0x5ac   :  { %332 = vrot.lane.b32.xlu0 %v328_v58, %s1341_s29  ;;  %v313_v58 = vmul.f32 %v1557_v2, %v1520_v19 }
 0x5dd   :  { %v1096_v0 = vpop.permute.xlu2 %1095 }
 0x5de   :  { %v1102_v1 = vmul.f32 %v1096_v0, %v738_v63  ;;  %v1101_v13 = vmul.f32 %v1096_v0, %v1708_v49 }
 0x5e0   :  { %1111 = vrot.lane.b32.xlu0 %v1102_v1, %s1342_s2 }
 0x5e5   :  { %v886_v5 = vpop.permute.xlu2 %885 }
 0x5e6   :  { %v891_v22 = vmul.f32 %v886_v5, %v1708_v49  ;;  %v892_v6 = vmul.f32 %v886_v5, %v738_v63  ;;  %v317_v63 = vsel %vm251_vm8, %v313_v58, 0.0 }
 0x5e8   :  { %899 = vrot.lane.b32.xlu1 %v891_v22, %s1342_s2  ;;  %901 = vrot.lane.b32.xlu0 %v892_v6, %s1342_s2 }
 0x5ed   :  { %v531_v30 = vpop.permute.xlu2 %530 }
 0x5ee   :  { %v537_v32 = vsel %vm341_vm7, %v531_v30, 0.0 }
 0x5f0   :  { %1109 = vrot.lane.b32.xlu1 %v1101_v13, %s1342_s2 }
 0x5ff   :  { %v888_v17 = vpop.permute.xlu1 %887 }
 0x600   :  { %v894_v24 = vmul.f32 %v888_v17, %v741_v3  ;;  %v893_v49 = vmul.f32 %v888_v17, %v1715_v54 }
 0x606   :  { %v1098_v14 = vpop.permute.xlu0 %1097 }
 0x607   :  { %v1104_v15 = vmul.f32 %v1098_v14, %v741_v3  ;;  %v1103_v27 = vmul.f32 %v1098_v14, %v1715_v54  ;;  %v987_v54 = vpop.f32.mrf.mxu1 }
 0x608   :  { %v1085_v55 = vmul.f32 %v1741_v46, %v987_v54  ;;  %v314_v46 = vsel %vm102_vm0, %v312_v60, 0.0 }
 0x609   :  { %1115 = vrot.lane.b32.xlu1 %v1104_v15, %s1342_s2 }
 0x60a   :  { %v1087_v57 = vsel %vm629_vm12, %v1085_v55, 0.0 }
 0x60e   :  { %v325_v18 = vpop.permute.xlu0 %324 }
 0x60f   :  { %v329_v25 = vmul.f32 %v325_v18, %v1501_v9  ;;  %v990_v45 = vpop.f32.mrf.mxu1 }
 0x610   :  { %v1086_v50 = vmul.f32 %v1751_v40, %v990_v45 }
 0x611   :  { %905 = vrot.lane.b32.xlu1 %v894_v24, %s1342_s2  ;;  %334 = vrot.lane.b32.xlu2 %v329_v25, %s1341_s29 }
 0x612   :  { %v1090_v47 = vsel %vm808_vm6, %v1086_v50, 0.0  ;;  %vm387_vm6 = vcmask 64512  }
 0x616   :  { %v529_v26 = vpop.permute.xlu0 %528 }
 0x617   :  { %v534_v28 = vsel %vm34_vm1, %v529_v26, 0.0 }
 0x618   :  { %535 = vadd.xlane.f32.xlu0 %v534_v28 }
 0x619   :  { %1113 = vrot.lane.b32.xlu2 %v1103_v27, %s1342_s2 }
 0x61e   :  { %v333_v33 = vpop.permute.xlu0 %332 }
 0x61f   :  { %v338_v9 = vsel %vm34_vm1, %v333_v33, 0.0 }
 0x621   :  { %903 = vrot.lane.b32.xlu2 %v893_v49, %s1342_s2 }
 0x64a   :  { %538 = vadd.xlane.f32.xlu2 %v537_v32 }
 0x652   :  { %339 = vadd.xlane.f32.xlu2 %v338_v9  ;;  %v1112_v35 = vpop.permute.xlu0 %1111 }
 0x65a   :  { %v900_v34 = vpop.permute.xlu1 %899  ;;  %v902_v29 = vpop.permute.xlu0 %901 }
 0x65b   :  { %v907_v8 = vsel %vm34_vm1, %v900_v34, %v902_v29 }
 0x65c   :  { %v911_v4 = vsel %vm744_vm5, %v907_v8, 0.0 }
 0x662   :  { %v1110_v36 = vpop.permute.xlu1 %1109 }
 0x663   :  { %v1117_v37 = vsel %vm34_vm1, %v1110_v36, %v1112_v35 }
 0x664   :  { %v1121_v39 = vsel %vm744_vm5, %v1117_v37, 0.0 }
 0x665   :  { %1122 = vadd.xlane.f32.xlu1 %v1121_v39 }
 0x66b   :  { %v335_v41 = vpop.permute.xlu2 %334 }
 0x66c   :  { %v342_v42 = vsel %vm341_vm7, %v335_v41, 0.0 }
 0x66d   :  { %343 = vadd.xlane.f32.xlu1 %v342_v42 }
 0x673   :  { %v1114_v48 = vpop.permute.xlu2 %1113 }
 0x675   :  { %511 = vadd.xlane.f32.xlu1 %v510_v44 }
 0x67b   :  { %v1116_v51 = vpop.permute.xlu1 %1115  ;;  %v904_v21 = vpop.permute.xlu2 %903 }
 0x67c   :  { %v1118_v12 = vsel %vm34_vm1, %v1114_v48, %v1116_v51 }
 0x67d   :  { %v1124_v53 = vsel %vm914_vm9, %v1118_v12, 0.0  ;;  %1091 = vadd.xlane.f32.xlu1 %v1090_v47 }
 0x67e   :  { %1125 = vadd.xlane.f32.xlu0 %v1124_v53 }
 0x683   :  { %v906_v31 = vpop.permute.xlu1 %905 }
 0x684   :  { %v908_v11 = vsel %vm34_vm1, %v904_v21, %v906_v31 }
 0x685   :  { %v915_v40 = vsel %vm914_vm9, %v908_v11, 0.0  ;;  %878 = vadd.xlane.f32.xlu1 %v877_v20 }
 0x686   :  { %916 = vadd.xlane.f32.xlu2 %v915_v40  ;;  %912 = vadd.xlane.f32.xlu0 %v911_v4 }
 0x68b   :  { %v536_v0 = vpop.xlane.xlu0 %535 }
 0x68c   :  { %v1225_v5 = vmul.f32 -1.442695, %v536_v0 }
 0x68e   :  { %1088 = vadd.xlane.f32.xlu2 %v1087_v57  ;;  %514 = vadd.xlane.f32.xlu0 %v513_v52  ;;  %1307 = vpow2.f32 %v1225_v5 }
 0x694   :  { %v1308_v2 = vpop.eup %1307 }
 0x695   :  { %v546_v61 = vadd.f32 1.0, %v1308_v2 }
 0x696   :  { %318 = vadd.xlane.f32.xlu2 %v317_v63  ;;  %315 = vadd.xlane.f32.xlu0 %v314_v46 }
 0x697   :  { %v559_v41 = vand.u32 2147483648, %v546_v61  ;;  %vm553_vm1 = vweird.f32 %v546_v61  ;;  %v557_v44 = vand.u32 2147483647, %v546_v61 }
 0x699   :  { %v560_v51 = vor.u32 1.1754944e-38, %v559_v41  ;;  %vm558_vm10 = vcmp.eq.f32.partialorder %v557_v44, 8.507059e+37 }
 0x69e   :  { %881 = vadd.xlane.f32.xlu0 %v880_v62 }
 0x6bd   :  { %v539_v1 = vpop.xlane.xlu2 %538 }
 0x6be   :  { %v1226_v22 = vmul.f32 -1.442695, %v539_v1 }
 0x6c0   :  { %1309 = vpow2.f32 %v1226_v22 }
 0x6c5   :  { %v340_v19 = vpop.xlane.xlu2 %339 }
 0x6c6   :  { %v1213_v16 = vmul.f32 -1.442695, %v340_v19  ;;  %v1310_v3 = vpop.eup %1309  ;;  %v1870_v19 = vld [vmem:[%s1971_s7] sm:$0xff] }
 0x6c7   :  { %v1806_v14 = vadd.f32 1.0, %v1310_v3 }
 0x6c8   :  { %1311 = vpow2.f32 %v1213_v16 }
 0x6c9   :  { %1313 = vrcp.f32 %v546_v61  ;;  %vm568_vm11 = vweird.f32 %v1806_v14  ;;  %v572_v31 = vand.u32 2147483647, %v1806_v14  ;;  %v574_v8 = vand.u32 2147483648, %v1806_v14 }
 0x6cb   :  { %v575_v22 = vor.u32 1.1754944e-38, %v574_v8  ;;  %vm573_vm9 = vcmp.eq.f32.partialorder %v572_v31, 8.507059e+37 }
 0x6ce   :  { %v1312_v59 = vpop.eup %1311 }
 0x6cf   :  { %v1314_v38 = vpop.eup %1313  ;;  %v1808_v24 = vadd.f32 1.0, %v1312_v59 }
 0x6d0   :  { %v549_v26 = vmul.f32 %v1314_v38, %v546_v61  ;;  %vm554_vm0 = vweird.f32 %v1314_v38 }
 0x6d1   :  { %vm555_vm8 = vmor %vm553_vm1, %vm554_vm0  ;;  %vm358_vm14 = vweird.f32 %v1808_v24  ;;  %v362_v58 = vand.u32 2147483647, %v1808_v24  ;;  %v364_v63 = vand.u32 2147483648, %v1808_v24 }
 0x6d2   :  { %v550_v27 = vsub.f32 1.0, %v549_v26 }
 0x6d3   :  { %vm1886_vm0 = vcmp.eq.f32.partialorder %v362_v58, 8.507059e+37 }
 0x6d4   :  { %v551_v33 = vmul.f32 %v1314_v38, %v550_v27 }
 0x6d6   :  { %v552_v36 = vadd.f32 %v1314_v38, %v551_v33 }
 0x6d8   :  { %v1123_v6 = vpop.xlane.xlu1 %1122  ;;  %v556_v48 = vsel %vm555_vm8, %v1314_v38, %v552_v36  ;;  %vm389_vm8 = vcmask 58368  }
 0x6d9   :  { %v1257_v13 = vmul.f32 -1.442695, %v1123_v6  ;;  %v561_v47 = vsel %vm558_vm10, %v560_v51, %v556_v48 }
 0x6db   :  { %1315 = vpow2.f32 %v1257_v13  ;;  %v365_v13 = vor.u32 1.1754944e-38, %v364_v63 }
 0x6e0   :  { %v344_v15 = vpop.xlane.xlu1 %343 }
 0x6e1   :  { %v1316_v17 = vpop.eup %1315  ;;  %v1214_v18 = vmul.f32 -1.442695, %v344_v15 }
 0x6e2   :  { %v1810_v25 = vadd.f32 1.0, %v1316_v17 }
 0x6e3   :  { %1317 = vpow2.f32 %v1214_v18 }
 0x6e4   :  { %1319 = vrcp.f32 %v1806_v14  ;;  %v1146_v23 = vand.u32 2147483648, %v1810_v25  ;;  %vm1140_vm4 = vweird.f32 %v1810_v25  ;;  %v1144_v2 = vand.u32 2147483647, %v1810_v25 }
 0x6e5   :  { %1321 = vrcp.f32 %v1808_v24 }
 0x6e6   :  { %1323 = vrcp.f32 %v1810_v25  ;;  %v1147_v38 = vor.u32 1.1754944e-38, %v1146_v23  ;;  %vm1145_vm10 = vcmp.eq.f32.partialorder %v1144_v2, 8.507059e+37 }
 0x6e8   :  { %v512_v56 = vpop.xlane.xlu1 %511 }
 0x6e9   :  { %v1318_v28 = vpop.eup %1317  ;;  %v578_v0 = vmul.f32 %v561_v47, %v512_v56 }
 0x6ea   :  { %v1815_v49 = vpop.eup %1319  ;;  %v1817_v30 = vadd.f32 1.0, %v1318_v28 }
 0x6eb   :  { %v1819_v32 = vpop.eup %1321  ;;  %v564_v34 = vmul.f32 %v1815_v49, %v1806_v14  ;;  %vm569_vm13 = vweird.f32 %v1815_v49  ;;  %v580_v18 = vmul.f32 %v578_v0, %v1870_v19 }
 0x6ec   :  { %1325 = vrcp.f32 %v1817_v30  ;;  %v1822_v9 = vpop.eup %1323  ;;  %v354_v35 = vmul.f32 %v1819_v32, %v1808_v24  ;;  %vm359_vm15 = vweird.f32 %v1819_v32  ;;  %vm1859_vm3 = vmor %vm568_vm11, %vm569_vm13  ;;  %v1901_v24 = vld [vmem:[%s1971_s7 + $0x8] sm:$0x3]  ;;  %v379_v27 = vand.u32 2147483648, %v1817_v30 }
 0x6ed   :  { %v1136_v39 = vmul.f32 %v1822_v9, %v1810_v25  ;;  %v565_v54 = vsub.f32 1.0, %v564_v34  ;;  %vm1141_vm2 = vweird.f32 %v1822_v9  ;;  %vm1878_vm5 = vmor %vm358_vm14, %vm359_vm15  ;;  %vm373_vm11 = vweird.f32 %v1817_v30 }
 0x6ee   :  { %v355_v45 = vsub.f32 1.0, %v354_v35  ;;  %vm1882_vm7 = vmor %vm1140_vm4, %vm1141_vm2  ;;  %v377_v35 = vand.u32 2147483647, %v1817_v30  ;;  %v380_v44 = vor.u32 1.1754944e-38, %v379_v27 }
 0x6ef   :  { %v1137_v50 = vsub.f32 1.0, %v1136_v39  ;;  %v566_v12 = vmul.f32 %v1815_v49, %v565_v54 }
 0x6f0   :  { %v356_v29 = vmul.f32 %v1819_v32, %v355_v45  ;;  %vm378_vm15 = vcmp.eq.f32.partialorder %v377_v35, 8.507059e+37 }
 0x6f1   :  { %v1126_v37 = vpop.xlane.xlu0 %1125  ;;  %v1138_v21 = vmul.f32 %v1822_v9, %v1137_v50  ;;  %v567_v4 = vadd.f32 %v1815_v49, %v566_v12 }
 0x6f2   :  { %v1258_v42 = vmul.f32 -1.442695, %v1126_v37  ;;  %v1830_v43 = vpop.eup %1325  ;;  %v1847_v60 = vadd.f32 %v1819_v32, %v356_v29 }
 0x6f3   :  { %v369_v53 = vmul.f32 %v1830_v43, %v1817_v30  ;;  %v1139_v46 = vadd.f32 %v1822_v9, %v1138_v21  ;;  %v571_v1 = vsel %vm1859_vm3, %v1815_v49, %v567_v4  ;;  %vm374_vm1 = vweird.f32 %v1830_v43 }
 0x6f4   :  { %1327 = vpow2.f32 %v1258_v42  ;;  %v576_v14 = vsel %vm573_vm9, %v575_v22, %v571_v1  ;;  %v361_v15 = vsel %vm1878_vm5, %v1819_v32, %v1847_v60  ;;  %vm1917_vm13 = vmor %vm373_vm11, %vm374_vm1  ;;  %v582_v42 = vsel %vm387_vm6, %v580_v18, 0.0  ;;  %v1092_v60 = vpop.xlane.xlu1 %1091 }
 0x6f5   :  { %v370_v55 = vsub.f32 1.0, %v369_v53  ;;  %v1143_v59 = vsel %vm1882_vm7, %v1822_v9, %v1139_v46 }
 0x6f6   :  { %v1148_v34 = vsel %vm1145_vm10, %v1147_v38, %v1143_v59 }
 0x6f7   :  { %v371_v5 = vmul.f32 %v1830_v43, %v370_v55 }
 0x6f9   :  { %v917_v7 = vpop.xlane.xlu2 %916  ;;  %v913_v20 = vpop.xlane.xlu0 %912  ;;  %v372_v26 = vadd.f32 %v1830_v43, %v371_v5 }
 0x6fa   :  { %v1328_v11 = vpop.eup %1327  ;;  %v1244_v40 = vmul.f32 -1.442695, %v917_v7  ;;  %v1243_v52 = vmul.f32 -1.442695, %v913_v20 }
 0x6fb   :  { %v1842_v57 = vadd.f32 1.0, %v1328_v11  ;;  %v376_v30 = vsel %vm1917_vm13, %v1830_v43, %v372_v26  ;;  %v366_v43 = vsel %vm1886_vm0, %v365_v13, %v361_v15 }
 0x6fc   :  { %1329 = vpow2.f32 %v1244_v40  ;;  %v381_v29 = vsel %vm378_vm15, %v380_v44, %v376_v30 }
 0x6fd   :  { %1331 = vrcp.f32 %v1842_v57  ;;  %v1161_v45 = vand.u32 2147483648, %v1842_v57  ;;  %v1159_v48 = vand.u32 2147483647, %v1842_v57  ;;  %vm1155_vm2 = vweird.f32 %v1842_v57 }
 0x6fe   :  { %1333 = vpow2.f32 %v1243_v52 }
 0x6ff   :  { %v1162_v40 = vor.u32 1.1754944e-38, %v1161_v45  ;;  %vm1160_vm4 = vcmp.eq.f32.partialorder %v1159_v48, 8.507059e+37  ;;  %v81_v45 = vld [vmem:[%s1972_s8] sm:$0x1]  ;;  %s1343_s8 = smov 8  }
 0x701   :  { %v1089_v3 = vpop.xlane.xlu2 %1088  ;;  %v515_v25 = vpop.xlane.xlu0 %514 }
 0x702   :  { %v1330_v17 = vpop.eup %1329  ;;  %v579_v32 = vmul.f32 %v576_v14, %v515_v25  ;;  %v1165_v37 = vmul.f32 %v1148_v34, %v1089_v3 }
 0x703   :  { %v1332_v28 = vpop.eup %1331  ;;  %v1906_v49 = vadd.f32 1.0, %v1330_v17 }
 0x704   :  { %v1334_v33 = vpop.eup %1333  ;;  %v1151_v9 = vmul.f32 %v1332_v28, %v1842_v57  ;;  %v581_v39 = vmul.f32 %v579_v32, %v1901_v24  ;;  %vm1156_vm14 = vweird.f32 %v1332_v28  ;;  %v1167_v53 = vmul.f32 %v1165_v37, %v1870_v19 }
 0x705   :  { %1335 = vrcp.f32 %v1906_v49  ;;  %v1912_v36 = vadd.f32 1.0, %v1334_v33  ;;  %vm1157_vm3 = vmor %vm1155_vm2, %vm1156_vm14  ;;  %v950_v23 = vand.u32 2147483647, %v1906_v49  ;;  %v952_v61 = vand.u32 2147483648, %v1906_v49 }
 0x706   :  { %v1152_v54 = vsub.f32 1.0, %v1151_v9  ;;  %v583_v50 = vsel %vm389_vm8, %v581_v39, 0.0  ;;  %v1169_v57 = vsel %vm387_vm6, %v1167_v53, 0.0  ;;  %vm946_vm0 = vweird.f32 %v1906_v49 }
 0x707   :  { %1337 = vrcp.f32 %v1912_v36  ;;  %v584_v12 = vadd.f32 %v583_v50, %v582_v42  ;;  %v937_v2 = vand.u32 2147483648, %v1912_v36  ;;  %v935_v38 = vand.u32 2147483647, %v1912_v36 }
 0x708   :  { %v1153_v51 = vmul.f32 %v1332_v28, %v1152_v54  ;;  %vm931_vm9 = vweird.f32 %v1912_v36  ;;  %vm951_vm10 = vcmp.eq.f32.partialorder %v950_v23, 8.507059e+37  ;;  %v953_v33 = vor.u32 1.1754944e-38, %v952_v61  ;;  %v879_v54 = vpop.xlane.xlu1 %878 }
 0x709   :  { %v319_v47 = vpop.xlane.xlu2 %318  ;;  %v585_v21 = vrot.slane %v584_v12, 4  ;;  %v316_v8 = vpop.xlane.xlu0 %315  ;;  %v938_v9 = vor.u32 1.1754944e-38, %v937_v2  ;;  %vm936_vm13 = vcmp.eq.f32.partialorder %v935_v38, 8.507059e+37  ;;  %vm595_vm14 = vcmask 1040384  }
 0x70a   :  { %v1154_v7 = vadd.f32 %v1332_v28, %v1153_v51  ;;  %v384_v31 = vmul.f32 %v381_v29, %v319_v47  ;;  %v383_v20 = vmul.f32 %v366_v43, %v316_v8 }
 0x70b   :  { %v1336_v11 = vpop.eup %1335  ;;  %v586_v55 = vadd.f32 %v585_v21, %v584_v12 }
 0x70c   :  { %v1158_v4 = vsel %vm1157_vm3, %v1332_v28, %v1154_v7  ;;  %v386_v56 = vmul.f32 %v384_v31, %v1901_v24  ;;  %v942_v52 = vmul.f32 %v1336_v11, %v1906_v49  ;;  %v385_v46 = vmul.f32 %v383_v20, %v1870_v19 }
 0x70d   :  { %v1338_v58 = vpop.eup %1337  ;;  %v1163_v63 = vsel %vm1160_vm4, %v1162_v40, %v1158_v4  ;;  %v587_v1 = vrot.slane %v586_v55, 2  ;;  %vm947_vm7 = vweird.f32 %v1336_v11 }
 0x70e   :  { %v927_v62 = vmul.f32 %v1338_v58, %v1912_v36  ;;  %v1166_v0 = vmul.f32 %v1163_v63, %v1092_v60  ;;  %v390_v5 = vsel %vm389_vm8, %v386_v56, 0.0  ;;  %v388_v22 = vsel %vm387_vm6, %v385_v46, 0.0  ;;  %vm948_vm1 = vmor %vm946_vm0, %vm947_vm7 }
 0x70f   :  { %v943_v16 = vsub.f32 1.0, %v942_v52  ;;  %v588_v3 = vadd.f32 %v587_v1, %v586_v55  ;;  %v391_v59 = vadd.f32 %v390_v5, %v388_v22  ;;  %vm932_vm5 = vweird.f32 %v1338_v58 }
 0x710   :  { %v928_v6 = vsub.f32 1.0, %v927_v62  ;;  %v1168_v13 = vmul.f32 %v1166_v0, %v1901_v24  ;;  %vm933_vm11 = vmor %vm931_vm9, %vm932_vm5 }
 0x711   :  { %v944_v14 = vmul.f32 %v1336_v11, %v943_v16  ;;  %v392_v18 = vrot.slane %v391_v59, 4  ;;  %v589_v25 = vrot.slane %v588_v3, 1  ;;  %v882_v42 = vpop.xlane.xlu0 %881 }
 0x712   :  { %v929_v15 = vmul.f32 %v1338_v58, %v928_v6  ;;  %v1170_v17 = vsel %vm389_vm8, %v1168_v13, 0.0 }
 0x713   :  { %v1171_v26 = vadd.f32 %v1170_v17, %v1169_v57  ;;  %v945_v27 = vadd.f32 %v1336_v11, %v944_v14  ;;  %v393_v28 = vadd.f32 %v392_v18, %v391_v59  ;;  %v590_v36 = vadd.f32 %v589_v25, %v588_v3 }
 0x714   :  { %v930_v32 = vadd.f32 %v1338_v58, %v929_v15 }
 0x715   :  { %v1172_v34 = vrot.slane %v1171_v26, 4  ;;  %v949_v35 = vsel %vm948_vm1, %v1336_v11, %v945_v27  ;;  %v394_v37 = vrot.slane %v393_v28, 2  ;;  %v591_v29 = vadd.f32 %v590_v36, %v81_v45 }
 0x716   :  { %v934_v39 = vsel %vm933_vm11, %v1338_v58, %v930_v32  ;;  %v954_v41 = vsel %vm951_vm10, %v953_v33, %v949_v35 }
 0x717   :  { %v1173_v30 = vadd.f32 %v1172_v34, %v1171_v26  ;;  %v939_v44 = vsel %vm936_vm13, %v938_v9, %v934_v39  ;;  %v957_v49 = vmul.f32 %v954_v41, %v882_v42  ;;  %v395_v48 = vadd.f32 %v394_v37, %v393_v28 }
 0x718   :  { %v956_v50 = vmul.f32 %v939_v44, %v879_v54  ;;  %v593_v40 = vrot.slane %v591_v29, 7 }
 0x719   :  { %v1174_v51 = vrot.slane %v1173_v30, 2  ;;  %v959_v12 = vmul.f32 %v957_v49, %v1901_v24  ;;  %v396_v47 = vrot.slane %v395_v48, 1 }
 0x71a   :  { %v958_v53 = vmul.f32 %v956_v50, %v1870_v19 }
 0x71b   :  { %v1175_v43 = vadd.f32 %v1174_v51, %v1173_v30  ;;  %v961_v7 = vsel %vm389_vm8, %v959_v12, 0.0  ;;  %v397_v31 = vadd.f32 %v396_v47, %v395_v48  ;;  %vm1193_vm8 = vcmask 189440  }
 0x71c   :  { %v960_v21 = vsel %vm387_vm6, %v958_v53, 0.0 }
 0x71d   :  { %v962_v8 = vadd.f32 %v961_v7, %v960_v21  ;;  %v398_v11 = vadd.f32 %v397_v31, %v81_v45  ;;  %v1176_v4 = vrot.slane %v1175_v43, 1 }
 0x71f   :  { %v963_v20 = vrot.slane %v962_v8, 4  ;;  %v596_v55 = vsel %vm595_vm14, %v398_v11, %v593_v40  ;;  %v1177_v24 = vadd.f32 %v1176_v4, %v1175_v43 }
 0x720   :  { %1184 = vrot.lane.b32.xlu2 %v596_v55, %s1343_s8 }
 0x721   :  { %v964_v56 = vadd.f32 %v963_v20, %v962_v8  ;;  %v1178_v60 = vadd.f32 %v1177_v24, %v81_v45 }
 0x723   :  { %v965_v19 = vrot.slane %v964_v56, 2  ;;  %v1180_v46 = vrot.slane %v1178_v60, 7 }
 0x725   :  { %v966_v52 = vadd.f32 %v965_v19, %v964_v56 }
 0x727   :  { %v967_v58 = vrot.slane %v966_v52, 1 }
 0x729   :  { %v968_v63 = vadd.f32 %v967_v58, %v966_v52 }
 0x72b   :  { %v969_v57 = vadd.f32 %v968_v63, %v81_v45 }
 0x72d   :  { %v1182_v23 = vsel %vm595_vm14, %v969_v57, %v1180_v46 }
 0x72e   :  { %1188 = vrot.lane.b32.xlu1 %v1182_v23, %s1344_s14 }
 0x77a   :  { %v1185_v62 = vpop.permute.xlu2 %1184 }
 0x77b   :  { %v1191_v0 = vsel %vm387_vm6, %v1692_v10, %v1185_v62 }
 0x7a0   :  { %v1189_v1 = vpop.permute.xlu1 %1188 }
 0x7a1   :  { %v1192_v5 = vsel %vm629_vm12, %v1191_v0, %v1189_v1 }
 0x7a2   :  { %1194 = vst.msk [vmem:[%s1973_s9] sm:$0x3] %vm1193_vm8, %v1192_v5 }

</bundles_post_ra>
